<compile_context>
chip_gen: v6e
topology: v6e:2x2x1
jax: 0.10.0
libtpu: 0.0.40
codegen_flags: <defaults>
</compile_context>

<pallas_src>
import functools

import jax
import jax.numpy as jnp
from jax.experimental import pallas as pl
from jax.experimental.pallas import tpu as pltpu

# ---- KAN spline hyper-parameters (efficient-KAN defaults) -------------------
GRID_SIZE = 5
SPLINE_ORDER = 3
GRID_RANGE = (-1.0, 1.0)
_H = (GRID_RANGE[1] - GRID_RANGE[0]) / GRID_SIZE
KNOTS = tuple(
    GRID_RANGE[0] + (i - SPLINE_ORDER) * _H
    for i in range(GRID_SIZE + 2 * SPLINE_ORDER + 1)
)  # 12 uniform knots -> 8 cubic B-spline bases
N_BASES = GRID_SIZE + SPLINE_ORDER  # 8
LANE = 128


def _round_up(x, m):
    return (x + m - 1) // m * m


def _device_kind():
    try:
        return jax.devices()[0].device_kind.lower()
    except Exception:
        return ""


def _elementwise_dtype():
    """bf16 basis math on chips with a bf16 VALU (v6e/v7x); f32 elsewhere."""
    kind = _device_kind()
    if "v6" in kind or "v7" in kind or "7x" in kind:
        return jnp.bfloat16
    return jnp.float32


def _compiler_params():
    kind = _device_kind()
    kwargs = dict(dimension_semantics=("parallel", "arbitrary"))
    if "v7" in kind or "7x" in kind:
        kwargs["vmem_limit_bytes"] = 48 * 1024 * 1024   # 64 MiB physical per TC
    elif "v5" in kind or "v6" in kind:
        kwargs["vmem_limit_bytes"] = 96 * 1024 * 1024   # 128 MiB physical
    return pltpu.CompilerParams(**kwargs)


# ------------------------- B-spline basis (optimized) ------------------------
def _bspline_bases(h):
    """Cox-de Boor on an (N, F) activation in h.dtype.

    VALU-optimized: d_j = h - t_j hoisted and reused; single (d_j >= 0)
    compare per knot with indicators ge[j] & ~ge[j+1]; constant reciprocals
    1/(t[j+k]-t[j]) = 1/(k*_H) folded (uniform grid); right term expressed as
    (1 - w_{j+1}) * B_{j+1}.
    """
    t = KNOTS
    n_knots = len(t)
    dt = h.dtype
    d = [h - tj for tj in t]               # 12 arrays, reused at every level
    ge = [dj >= 0.0 for dj in d]           # one compare per knot
    bases = [
        (ge[j] & (~ge[j + 1])).astype(jnp.float32).astype(dt)
        for j in range(n_knots - 1)
    ]
    for k in range(1, SPLINE_ORDER + 1):
        inv = 1.0 / (k * _H)               # uniform grid: t[j+k] - t[j] == k*_H
        w = [d[j] * inv for j in range(n_knots - k)]
        bases = [
            w[j] * bases[j] + (1.0 - w[j + 1]) * bases[j + 1]
            for j in range(n_knots - 1 - k)
        ]
    return bases  # list of N_BASES arrays, each (N, F) in h.dtype


def _bspline_bases_ref(h):
    """Naive textbook recursion — used only by the pure-JAX reference."""
    t = KNOTS
    bases = [
        jnp.where((h >= t[j]) & (h < t[j + 1]), 1.0, 0.0).astype(h.dtype)
        for j in range(len(t) - 1)
    ]
    for k in range(1, SPLINE_ORDER + 1):
        bases = [
            (h - t[j]) / (t[j + k] - t[j]) * bases[j]
            + (t[j + k + 1] - h) / (t[j + k + 1] - t[j + 1]) * bases[j + 1]
            for j in range(len(t) - 1 - k)
        ]
    return bases


# ------------------------------ Pallas kernel --------------------------------
def kan_mlp_kernel(x_ref, w1_ref, b1_ref, wkan_ref, o_ref, act_ref, feat_ref,
                   *, compute_dtype):
    """One (batch-tile, layer) grid step. Activation carried in VMEM scratch.

    x_ref    : (TILE_N, Fpad)        bf16  (input batch tile)
    w1_ref   : (1, Fpad, Fpad)       bf16  (this layer's nn.Linear weight, pre-T)
    b1_ref   : (1, 1, Fpad)          f32   (this layer's nn.Linear bias)
    wkan_ref : (1, 9*Fpad, Fpad)     bf16  ([Wb ; Wsp_0 ; ... ; Wsp_7] fused)
    o_ref    : (TILE_N, Fpad)        f32   (written only on last layer)
    act_ref  : (TILE_N, Fpad)        bf16  VMEM scratch (layer-to-layer carry)
    feat_ref : (TILE_N, 9*Fpad)      bf16  VMEM scratch (fused KAN features)
    """
    fpad = x_ref.shape[-1]
    l = pl.program_id(1)
    last = pl.num_programs(1) - 1

    @pl.when(l == 0)
    def _():
        act_ref[...] = x_ref[...]

    # ---- Linear(in, out) + bias: bf16 MXU operands, f32 accumulation --------
    h = jnp.dot(act_ref[...], w1_ref[0], preferred_element_type=jnp.float32)
    h = h + b1_ref[0]                                  # (1, Fpad) broadcast, f32
    # Dropout: identity (inference-mode forward semantics)

    # ---- KANLinear features written straight into the bf16 scratch slab -----
    # SiLU base path: 1 EUP op + 1 mul, stays f32 (EUP slot is not the bottleneck)
    feat_ref[:, 0:fpad] = (h * jax.nn.sigmoid(h)).astype(jnp.bfloat16)
    # Spline bases: VALU-heavy recursion in compute_dtype (bf16 on v6e/v7x)
    hc = h.astype(compute_dtype)
    bases = _bspline_bases(hc)
    for c in range(N_BASES):
        feat_ref[:, (c + 1) * fpad:(c + 2) * fpad] = bases[c].astype(jnp.bfloat16)

    # ---- single long-K matmul over [silu(h), B_0(h), ..., B_7(h)] -----------
    out = jnp.dot(feat_ref[...], wkan_ref[0], preferred_element_type=jnp.float32)
    act_ref[...] = out.astype(jnp.bfloat16)            # carry to next layer

    @pl.when(l == last)
    def _():
        o_ref[...] = out.astype(o_ref.dtype)


# ------------------------------ Parameter setup ------------------------------
def init_kan_mlp_params(key, in_features, out_features, hidden_states):
    """Builds stacked, zero-padded, pre-transposed, bf16 weights."""
    dims = [in_features] + list(hidden_states) + [out_features]
    fpad = max(_round_up(d, LANE) for d in dims)       # common lane-dense width
    num_layers = len(dims) - 1
    keys = jax.random.split(key, num_layers)

    w1_all, b1_all, wkan_all = [], [], []
    for l in range(num_layers):
        fin, fout = dims[l], dims[l + 1]
        k1, k2, k3, k4, k5 = jax.random.split(keys[l], 5)
        # nn.Linear weight (fout, fin) -> stored transposed (fin, fout)
        w1 = jax.random.normal(k1, (fin, fout), jnp.float32) * 0.1
        b1 = jax.random.normal(k2, (fout,), jnp.float32) * 0.1
        # KANLinear base_weight (fout, fout) -> transposed (in, out)
        wb = jax.random.normal(k3, (fout, fout), jnp.float32) * 0.1
        # KANLinear spline_weight (out, in, 8) and spline_scaler (out, in)
        spline_w = jax.random.normal(k4, (fout, fout, N_BASES), jnp.float32) * 0.1
        spline_scaler = jax.random.normal(k5, (fout, fout), jnp.float32) * 0.1
        wsp = jnp.transpose(spline_w * spline_scaler[..., None], (2, 1, 0))  # (8,in,out)

        # zero-pad to (fpad, fpad); zero rows/cols guarantee padded features
        # contribute nothing and padded outputs stay exactly zero.
        w1p = jnp.zeros((fpad, fpad), jnp.float32).at[:fin, :fout].set(w1)
        b1p = jnp.zeros((1, fpad), jnp.float32).at[0, :fout].set(b1)
        wkan = jnp.concatenate([wb[None], wsp], axis=0)          # (9, fout, fout)
        wkanp = (jnp.zeros((1 + N_BASES, fpad, fpad), jnp.float32)
                 .at[:, :fout, :fout].set(wkan)
                 .reshape((1 + N_BASES) * fpad, fpad))           # fused long-K weight

        w1_all.append(w1p)
        b1_all.append(b1p)
        wkan_all.append(wkanp)

    return dict(
        w1=jnp.stack(w1_all).astype(jnp.bfloat16),      # (L, fpad, fpad)
        b1=jnp.stack(b1_all),                           # (L, 1, fpad) f32
        wkan=jnp.stack(wkan_all).astype(jnp.bfloat16),  # (L, 9*fpad, fpad)
        dims=dims,
        fpad=fpad,
    )


# --------------------------------- Wrapper -----------------------------------
def kan_mlp_forward(params, x, compute_dtype=None):
    if compute_dtype is None:
        compute_dtype = _elementwise_dtype()
    n, fin = x.shape
    fpad = params["fpad"]
    dims = params["dims"]
    num_layers = params["w1"].shape[0]

    # batch tile: multiple of 16 (bf16 sublane packing / 256-wide MXU rows)
    tile_n = min(256, _round_up(n, 16))
    n_pad = _round_up(n, tile_n)
    xp = (jnp.zeros((n_pad, fpad), jnp.bfloat16)
          .at[:n, :fin].set(x.astype(jnp.bfloat16)))

    kernel = functools.partial(kan_mlp_kernel, compute_dtype=compute_dtype)

    grid = (n_pad // tile_n, num_layers)   # (batch tiles, layers)
    out = pl.pallas_call(
        kernel,
        out_shape=jax.ShapeDtypeStruct((n_pad, fpad), jnp.float32),
        grid=grid,
        in_specs=[
            # input tile: constant across the layer axis (no re-DMA)
            pl.BlockSpec((tile_n, fpad), lambda i, l: (i, 0)),
            # per-layer weight streaming: one layer slab in VMEM (+ prefetch)
            pl.BlockSpec((1, fpad, fpad), lambda i, l: (l, 0, 0)),
            pl.BlockSpec((1, 1, fpad), lambda i, l: (l, 0, 0)),
            pl.BlockSpec((1, (1 + N_BASES) * fpad, fpad), lambda i, l: (l, 0, 0)),
        ],
        # output tile written only on the last layer step (accumulator pattern)
        out_specs=pl.BlockSpec((tile_n, fpad), lambda i, l: (i, 0)),
        scratch_shapes=[
            pltpu.VMEM((tile_n, fpad), jnp.bfloat16),                 # act carry
            pltpu.VMEM((tile_n, (1 + N_BASES) * fpad), jnp.bfloat16),  # KAN features
        ],
        compiler_params=_compiler_params(),
    )(xp, params["w1"], params["b1"], params["wkan"])
    return out[:n, :dims[-1]]


# ----------------------------- Pure-JAX reference ----------------------------
def kan_mlp_reference(params, x, compute_dtype):
    """Mirrors the kernel's dtype flow (bf16-at-dot, compute_dtype basis math)
    but uses the naive textbook Cox-de Boor recursion."""
    dims, fpad = params["dims"], params["fpad"]
    n, fin = x.shape
    act = (jnp.zeros((n, fpad), jnp.bfloat16)
           .at[:, :fin].set(x.astype(jnp.bfloat16)))
    w1 = params["w1"].astype(jnp.float32)
    b1 = params["b1"]
    wkan = params["wkan"].astype(jnp.float32)
    out = None
    for l in range(w1.shape[0]):
        h = act.astype(jnp.float32) @ w1[l] + b1[l]
        s = h * jax.nn.sigmoid(h)                        # SiLU in f32 (as kernel)
        hc = h.astype(compute_dtype)
        feats = [s.astype(jnp.bfloat16)] + [
            b.astype(jnp.bfloat16) for b in _bspline_bases_ref(hc)
        ]
        feat = jnp.concatenate(feats, axis=-1).astype(jnp.float32)
        out = feat @ wkan[l]
        act = out.astype(jnp.bfloat16)
    return out[:, :dims[-1]]


# ----------------------------------- Main ------------------------------------
if __name__ == "__main__":
    key = jax.random.PRNGKey(0)
    kx, kp = jax.random.split(key)

    batch = 8
    in_features = 16
    hidden_states = [32, 32]
    out_features = 8

    x = jax.random.normal(kx, (batch, in_features), jnp.float32)
    params = init_kan_mlp_params(kp, in_features, out_features, hidden_states)

    compute_dtype = _elementwise_dtype()
    out = jax.block_until_ready(kan_mlp_forward(params, x, compute_dtype))
    ref = kan_mlp_reference(params, x, compute_dtype)

    assert out.shape == (batch, out_features), out.shape
    assert bool(jnp.all(jnp.isfinite(out)))
    max_err = float(jnp.max(jnp.abs(out - ref)))
    tol = 2e-3 if compute_dtype == jnp.float32 else 2e-2
    assert max_err < tol, (max_err, tol)

    print("KERNEL_OK")
</pallas_src>

<mosaic_0001>
module attributes {stable_mosaic.version = 11 : i64} {
  func.func @kan_mlp_kernel(%arg0: i32, %arg1: i32, %arg2: memref<16x128xbf16, #tpu.memory_space<vmem>>, %arg3: memref<1x128x128xbf16, #tpu.memory_space<vmem>>, %arg4: memref<1x1x128xf32, #tpu.memory_space<vmem>>, %arg5: memref<1x1152x128xbf16, #tpu.memory_space<vmem>>, %arg6: memref<16x128xf32, #tpu.memory_space<vmem>>, %arg7: memref<16x128xbf16, #tpu.memory_space<vmem>>, %arg8: memref<16x1152xbf16, #tpu.memory_space<vmem>>) attributes {dimension_semantics = [#tpu.dimension_semantics<parallel>, #tpu.dimension_semantics<arbitrary>], iteration_bounds = array<i64: 1, 3>, scalar_prefetch = 0 : i64, scratch_operands = 2 : i64, tpu.core_type = #tpu.core_type<tc>, window_params = [{transform_indices = @transform_0, window_bounds = array<i64: 16, 128>}, {transform_indices = @transform_1, window_bounds = array<i64: 1, 128, 128>}, {transform_indices = @transform_2, window_bounds = array<i64: 1, 1, 128>}, {transform_indices = @transform_3, window_bounds = array<i64: 1, 1152, 128>}, {transform_indices = @transform_4, window_bounds = array<i64: 16, 128>}]} {
    %c0_i32 = arith.constant 0 : i32
    %0 = arith.cmpi eq, %arg1, %c0_i32 : i32
    %1 = arith.extui %0 : i1 to i32
    %c0_i32_0 = arith.constant 0 : i32
    %2 = arith.cmpi ne, %1, %c0_i32_0 : i32
    scf.if %2 {
      %c0_120 = arith.constant 0 : index
      %c0_121 = arith.constant 0 : index
      %331 = vector.load %arg2[%c0_120, %c0_121] : memref<16x128xbf16, #tpu.memory_space<vmem>>, vector<16x128xbf16>
      %c0_122 = arith.constant 0 : index
      %c0_123 = arith.constant 0 : index
      %332 = vector.load %arg7[%c0_122, %c0_123] : memref<16x128xbf16, #tpu.memory_space<vmem>>, vector<16x128xbf16>
      tpu.vector_store %arg7[%c0_122, %c0_123], %331 {strides = array<i32>} : memref<16x128xbf16, #tpu.memory_space<vmem>>, vector<16x128xbf16>,
    } else {
    }
    %c0 = arith.constant 0 : index
    %c0_1 = arith.constant 0 : index
    %3 = vector.load %arg7[%c0, %c0_1] : memref<16x128xbf16, #tpu.memory_space<vmem>>, vector<16x128xbf16>
    %c0_2 = arith.constant 0 : index
    %c0_3 = arith.constant 0 : index
    %c0_4 = arith.constant 0 : index
    %4 = vector.load %arg3[%c0_2, %c0_3, %c0_4] : memref<1x128x128xbf16, #tpu.memory_space<vmem>>, vector<1x128x128xbf16>
    %5 = vector.shape_cast %4 : vector<1x128x128xbf16> to vector<128x128xbf16>
    %cst = arith.constant dense<0.000000e+00> : vector<16x128xf32>
    %6 = tpu.matmul %3, %5, %cst {dimension_numbers = #tpu.dot_dimension_numbers<[1], [0], [0], [1], [0, 0, 1, 1], [], []>} : vector<16x128xbf16>, vector<128x128xbf16>, vector<16x128xf32> -> vector<16x128xf32>
    %c0_5 = arith.constant 0 : index
    %c0_6 = arith.constant 0 : index
    %c0_7 = arith.constant 0 : index
    %7 = vector.load %arg4[%c0_5, %c0_6, %c0_7] : memref<1x1x128xf32, #tpu.memory_space<vmem>>, vector<1x1x128xf32>
    %8 = vector.shape_cast %7 : vector<1x1x128xf32> to vector<1x128xf32>
    %9 = vector.broadcast %8 : vector<1x128xf32> to vector<16x128xf32>
    %10 = arith.addf %6, %9 : vector<16x128xf32>
    %11 = arith.negf %10 : vector<16x128xf32>
    %12 = math.exp %11 : vector<16x128xf32>
    %cst_8 = arith.constant 1.000000e+00 : f32
    %13 = vector.broadcast %cst_8 : f32 to vector<16x128xf32>
    %14 = arith.addf %13, %12 : vector<16x128xf32>
    %15 = arith.divf %13, %14 : vector<16x128xf32>
    %16 = arith.mulf %10, %15 : vector<16x128xf32>
    %17 = arith.truncf %16 : vector<16x128xf32> to vector<16x128xbf16>
    %c0_9 = arith.constant 0 : index
    %c0_10 = arith.constant 0 : index
    %18 = vector.load %arg8[%c0_9, %c0_10] : memref<16x1152xbf16, #tpu.memory_space<vmem>>, vector<16x128xbf16>
    tpu.vector_store %arg8[%c0_9, %c0_10], %17 {strides = array<i32>} : memref<16x1152xbf16, #tpu.memory_space<vmem>>, vector<16x128xbf16>,
    %cst_11 = arith.constant -2.200000e+00 : f32
    %19 = vector.broadcast %cst_11 : f32 to vector<16x128xf32>
    %20 = arith.subf %10, %19 : vector<16x128xf32>
    %cst_12 = arith.constant -1.800000e+00 : f32
    %21 = vector.broadcast %cst_12 : f32 to vector<16x128xf32>
    %22 = arith.subf %10, %21 : vector<16x128xf32>
    %cst_13 = arith.constant -1.400000e+00 : f32
    %23 = vector.broadcast %cst_13 : f32 to vector<16x128xf32>
    %24 = arith.subf %10, %23 : vector<16x128xf32>
    %cst_14 = arith.constant -1.000000e+00 : f32
    %25 = vector.broadcast %cst_14 : f32 to vector<16x128xf32>
    %26 = arith.subf %10, %25 : vector<16x128xf32>
    %cst_15 = arith.constant -6.000000e-01 : f32
    %27 = vector.broadcast %cst_15 : f32 to vector<16x128xf32>
    %28 = arith.subf %10, %27 : vector<16x128xf32>
    %cst_16 = arith.constant -2.000000e-01 : f32
    %29 = vector.broadcast %cst_16 : f32 to vector<16x128xf32>
    %30 = arith.subf %10, %29 : vector<16x128xf32>
    %cst_17 = arith.constant 2.000000e-01 : f32
    %31 = vector.broadcast %cst_17 : f32 to vector<16x128xf32>
    %32 = arith.subf %10, %31 : vector<16x128xf32>
    %cst_18 = arith.constant 6.000000e-01 : f32
    %33 = vector.broadcast %cst_18 : f32 to vector<16x128xf32>
    %34 = arith.subf %10, %33 : vector<16x128xf32>
    %cst_19 = arith.constant 1.000000e+00 : f32
    %35 = vector.broadcast %cst_19 : f32 to vector<16x128xf32>
    %36 = arith.subf %10, %35 : vector<16x128xf32>
    %cst_20 = arith.constant 1.400000e+00 : f32
    %37 = vector.broadcast %cst_20 : f32 to vector<16x128xf32>
    %38 = arith.subf %10, %37 : vector<16x128xf32>
    %cst_21 = arith.constant 1.800000e+00 : f32
    %39 = vector.broadcast %cst_21 : f32 to vector<16x128xf32>
    %40 = arith.subf %10, %39 : vector<16x128xf32>
    %cst_22 = arith.constant 2.200000e+00 : f32
    %41 = vector.broadcast %cst_22 : f32 to vector<16x128xf32>
    %42 = arith.subf %10, %41 : vector<16x128xf32>
    %cst_23 = arith.constant 0.000000e+00 : f32
    %43 = vector.broadcast %cst_23 : f32 to vector<16x128xf32>
    %44 = arith.cmpf oge, %20, %43 : vector<16x128xf32>
    %cst_24 = arith.constant 0.000000e+00 : f32
    %45 = vector.broadcast %cst_24 : f32 to vector<16x128xf32>
    %46 = arith.cmpf oge, %22, %45 : vector<16x128xf32>
    %cst_25 = arith.constant 0.000000e+00 : f32
    %47 = vector.broadcast %cst_25 : f32 to vector<16x128xf32>
    %48 = arith.cmpf oge, %24, %47 : vector<16x128xf32>
    %cst_26 = arith.constant 0.000000e+00 : f32
    %49 = vector.broadcast %cst_26 : f32 to vector<16x128xf32>
    %50 = arith.cmpf oge, %26, %49 : vector<16x128xf32>
    %cst_27 = arith.constant 0.000000e+00 : f32
    %51 = vector.broadcast %cst_27 : f32 to vector<16x128xf32>
    %52 = arith.cmpf oge, %28, %51 : vector<16x128xf32>
    %cst_28 = arith.constant 0.000000e+00 : f32
    %53 = vector.broadcast %cst_28 : f32 to vector<16x128xf32>
    %54 = arith.cmpf oge, %30, %53 : vector<16x128xf32>
    %cst_29 = arith.constant 0.000000e+00 : f32
    %55 = vector.broadcast %cst_29 : f32 to vector<16x128xf32>
    %56 = arith.cmpf oge, %32, %55 : vector<16x128xf32>
    %cst_30 = arith.constant 0.000000e+00 : f32
    %57 = vector.broadcast %cst_30 : f32 to vector<16x128xf32>
    %58 = arith.cmpf oge, %34, %57 : vector<16x128xf32>
    %cst_31 = arith.constant 0.000000e+00 : f32
    %59 = vector.broadcast %cst_31 : f32 to vector<16x128xf32>
    %60 = arith.cmpf oge, %36, %59 : vector<16x128xf32>
    %cst_32 = arith.constant 0.000000e+00 : f32
    %61 = vector.broadcast %cst_32 : f32 to vector<16x128xf32>
    %62 = arith.cmpf oge, %38, %61 : vector<16x128xf32>
    %cst_33 = arith.constant 0.000000e+00 : f32
    %63 = vector.broadcast %cst_33 : f32 to vector<16x128xf32>
    %64 = arith.cmpf oge, %40, %63 : vector<16x128xf32>
    %cst_34 = arith.constant 0.000000e+00 : f32
    %65 = vector.broadcast %cst_34 : f32 to vector<16x128xf32>
    %66 = arith.cmpf oge, %42, %65 : vector<16x128xf32>
    %cst_35 = arith.constant dense<true> : vector<16x128xi1>
    %67 = arith.xori %46, %cst_35 : vector<16x128xi1>
    %68 = arith.andi %44, %67 : vector<16x128xi1>
    %69 = arith.extui %68 : vector<16x128xi1> to vector<16x128xi32>
    %70 = arith.sitofp %69 : vector<16x128xi32> to vector<16x128xf32>
    %cst_36 = arith.constant dense<true> : vector<16x128xi1>
    %71 = arith.xori %48, %cst_36 : vector<16x128xi1>
    %72 = arith.andi %46, %71 : vector<16x128xi1>
    %73 = arith.extui %72 : vector<16x128xi1> to vector<16x128xi32>
    %74 = arith.sitofp %73 : vector<16x128xi32> to vector<16x128xf32>
    %cst_37 = arith.constant dense<true> : vector<16x128xi1>
    %75 = arith.xori %50, %cst_37 : vector<16x128xi1>
    %76 = arith.andi %48, %75 : vector<16x128xi1>
    %77 = arith.extui %76 : vector<16x128xi1> to vector<16x128xi32>
    %78 = arith.sitofp %77 : vector<16x128xi32> to vector<16x128xf32>
    %cst_38 = arith.constant dense<true> : vector<16x128xi1>
    %79 = arith.xori %52, %cst_38 : vector<16x128xi1>
    %80 = arith.andi %50, %79 : vector<16x128xi1>
    %81 = arith.extui %80 : vector<16x128xi1> to vector<16x128xi32>
    %82 = arith.sitofp %81 : vector<16x128xi32> to vector<16x128xf32>
    %cst_39 = arith.constant dense<true> : vector<16x128xi1>
    %83 = arith.xori %54, %cst_39 : vector<16x128xi1>
    %84 = arith.andi %52, %83 : vector<16x128xi1>
    %85 = arith.extui %84 : vector<16x128xi1> to vector<16x128xi32>
    %86 = arith.sitofp %85 : vector<16x128xi32> to vector<16x128xf32>
    %cst_40 = arith.constant dense<true> : vector<16x128xi1>
    %87 = arith.xori %56, %cst_40 : vector<16x128xi1>
    %88 = arith.andi %54, %87 : vector<16x128xi1>
    %89 = arith.extui %88 : vector<16x128xi1> to vector<16x128xi32>
    %90 = arith.sitofp %89 : vector<16x128xi32> to vector<16x128xf32>
    %cst_41 = arith.constant dense<true> : vector<16x128xi1>
    %91 = arith.xori %58, %cst_41 : vector<16x128xi1>
    %92 = arith.andi %56, %91 : vector<16x128xi1>
    %93 = arith.extui %92 : vector<16x128xi1> to vector<16x128xi32>
    %94 = arith.sitofp %93 : vector<16x128xi32> to vector<16x128xf32>
    %cst_42 = arith.constant dense<true> : vector<16x128xi1>
    %95 = arith.xori %60, %cst_42 : vector<16x128xi1>
    %96 = arith.andi %58, %95 : vector<16x128xi1>
    %97 = arith.extui %96 : vector<16x128xi1> to vector<16x128xi32>
    %98 = arith.sitofp %97 : vector<16x128xi32> to vector<16x128xf32>
    %cst_43 = arith.constant dense<true> : vector<16x128xi1>
    %99 = arith.xori %62, %cst_43 : vector<16x128xi1>
    %100 = arith.andi %60, %99 : vector<16x128xi1>
    %101 = arith.extui %100 : vector<16x128xi1> to vector<16x128xi32>
    %102 = arith.sitofp %101 : vector<16x128xi32> to vector<16x128xf32>
    %cst_44 = arith.constant dense<true> : vector<16x128xi1>
    %103 = arith.xori %64, %cst_44 : vector<16x128xi1>
    %104 = arith.andi %62, %103 : vector<16x128xi1>
    %105 = arith.extui %104 : vector<16x128xi1> to vector<16x128xi32>
    %106 = arith.sitofp %105 : vector<16x128xi32> to vector<16x128xf32>
    %cst_45 = arith.constant dense<true> : vector<16x128xi1>
    %107 = arith.xori %66, %cst_45 : vector<16x128xi1>
    %108 = arith.andi %64, %107 : vector<16x128xi1>
    %109 = arith.extui %108 : vector<16x128xi1> to vector<16x128xi32>
    %110 = arith.sitofp %109 : vector<16x128xi32> to vector<16x128xf32>
    %cst_46 = arith.constant 2.500000e+00 : f32
    %111 = vector.broadcast %cst_46 : f32 to vector<16x128xf32>
    %112 = arith.mulf %20, %111 : vector<16x128xf32>
    %cst_47 = arith.constant 2.500000e+00 : f32
    %113 = vector.broadcast %cst_47 : f32 to vector<16x128xf32>
    %114 = arith.mulf %22, %113 : vector<16x128xf32>
    %cst_48 = arith.constant 2.500000e+00 : f32
    %115 = vector.broadcast %cst_48 : f32 to vector<16x128xf32>
    %116 = arith.mulf %24, %115 : vector<16x128xf32>
    %cst_49 = arith.constant 2.500000e+00 : f32
    %117 = vector.broadcast %cst_49 : f32 to vector<16x128xf32>
    %118 = arith.mulf %26, %117 : vector<16x128xf32>
    %cst_50 = arith.constant 2.500000e+00 : f32
    %119 = vector.broadcast %cst_50 : f32 to vector<16x128xf32>
    %120 = arith.mulf %28, %119 : vector<16x128xf32>
    %cst_51 = arith.constant 2.500000e+00 : f32
    %121 = vector.broadcast %cst_51 : f32 to vector<16x128xf32>
    %122 = arith.mulf %30, %121 : vector<16x128xf32>
    %cst_52 = arith.constant 2.500000e+00 : f32
    %123 = vector.broadcast %cst_52 : f32 to vector<16x128xf32>
    %124 = arith.mulf %32, %123 : vector<16x128xf32>
    %cst_53 = arith.constant 2.500000e+00 : f32
    %125 = vector.broadcast %cst_53 : f32 to vector<16x128xf32>
    %126 = arith.mulf %34, %125 : vector<16x128xf32>
    %cst_54 = arith.constant 2.500000e+00 : f32
    %127 = vector.broadcast %cst_54 : f32 to vector<16x128xf32>
    %128 = arith.mulf %36, %127 : vector<16x128xf32>
    %cst_55 = arith.constant 2.500000e+00 : f32
    %129 = vector.broadcast %cst_55 : f32 to vector<16x128xf32>
    %130 = arith.mulf %38, %129 : vector<16x128xf32>
    %cst_56 = arith.constant 2.500000e+00 : f32
    %131 = vector.broadcast %cst_56 : f32 to vector<16x128xf32>
    %132 = arith.mulf %40, %131 : vector<16x128xf32>
    %133 = arith.mulf %112, %70 : vector<16x128xf32>
    %cst_57 = arith.constant 1.000000e+00 : f32
    %134 = vector.broadcast %cst_57 : f32 to vector<16x128xf32>
    %135 = arith.subf %134, %114 : vector<16x128xf32>
    %136 = arith.mulf %135, %74 : vector<16x128xf32>
    %137 = arith.addf %133, %136 : vector<16x128xf32>
    %138 = arith.mulf %114, %74 : vector<16x128xf32>
    %cst_58 = arith.constant 1.000000e+00 : f32
    %139 = vector.broadcast %cst_58 : f32 to vector<16x128xf32>
    %140 = arith.subf %139, %116 : vector<16x128xf32>
    %141 = arith.mulf %140, %78 : vector<16x128xf32>
    %142 = arith.addf %138, %141 : vector<16x128xf32>
    %143 = arith.mulf %116, %78 : vector<16x128xf32>
    %cst_59 = arith.constant 1.000000e+00 : f32
    %144 = vector.broadcast %cst_59 : f32 to vector<16x128xf32>
    %145 = arith.subf %144, %118 : vector<16x128xf32>
    %146 = arith.mulf %145, %82 : vector<16x128xf32>
    %147 = arith.addf %143, %146 : vector<16x128xf32>
    %148 = arith.mulf %118, %82 : vector<16x128xf32>
    %cst_60 = arith.constant 1.000000e+00 : f32
    %149 = vector.broadcast %cst_60 : f32 to vector<16x128xf32>
    %150 = arith.subf %149, %120 : vector<16x128xf32>
    %151 = arith.mulf %150, %86 : vector<16x128xf32>
    %152 = arith.addf %148, %151 : vector<16x128xf32>
    %153 = arith.mulf %120, %86 : vector<16x128xf32>
    %cst_61 = arith.constant 1.000000e+00 : f32
    %154 = vector.broadcast %cst_61 : f32 to vector<16x128xf32>
    %155 = arith.subf %154, %122 : vector<16x128xf32>
    %156 = arith.mulf %155, %90 : vector<16x128xf32>
    %157 = arith.addf %153, %156 : vector<16x128xf32>
    %158 = arith.mulf %122, %90 : vector<16x128xf32>
    %cst_62 = arith.constant 1.000000e+00 : f32
    %159 = vector.broadcast %cst_62 : f32 to vector<16x128xf32>
    %160 = arith.subf %159, %124 : vector<16x128xf32>
    %161 = arith.mulf %160, %94 : vector<16x128xf32>
    %162 = arith.addf %158, %161 : vector<16x128xf32>
    %163 = arith.mulf %124, %94 : vector<16x128xf32>
    %cst_63 = arith.constant 1.000000e+00 : f32
    %164 = vector.broadcast %cst_63 : f32 to vector<16x128xf32>
    %165 = arith.subf %164, %126 : vector<16x128xf32>
    %166 = arith.mulf %165, %98 : vector<16x128xf32>
    %167 = arith.addf %163, %166 : vector<16x128xf32>
    %168 = arith.mulf %126, %98 : vector<16x128xf32>
    %cst_64 = arith.constant 1.000000e+00 : f32
    %169 = vector.broadcast %cst_64 : f32 to vector<16x128xf32>
    %170 = arith.subf %169, %128 : vector<16x128xf32>
    %171 = arith.mulf %170, %102 : vector<16x128xf32>
    %172 = arith.addf %168, %171 : vector<16x128xf32>
    %173 = arith.mulf %128, %102 : vector<16x128xf32>
    %cst_65 = arith.constant 1.000000e+00 : f32
    %174 = vector.broadcast %cst_65 : f32 to vector<16x128xf32>
    %175 = arith.subf %174, %130 : vector<16x128xf32>
    %176 = arith.mulf %175, %106 : vector<16x128xf32>
    %177 = arith.addf %173, %176 : vector<16x128xf32>
    %178 = arith.mulf %130, %106 : vector<16x128xf32>
    %cst_66 = arith.constant 1.000000e+00 : f32
    %179 = vector.broadcast %cst_66 : f32 to vector<16x128xf32>
    %180 = arith.subf %179, %132 : vector<16x128xf32>
    %181 = arith.mulf %180, %110 : vector<16x128xf32>
    %182 = arith.addf %178, %181 : vector<16x128xf32>
    %cst_67 = arith.constant 1.250000e+00 : f32
    %183 = vector.broadcast %cst_67 : f32 to vector<16x128xf32>
    %184 = arith.mulf %20, %183 : vector<16x128xf32>
    %cst_68 = arith.constant 1.250000e+00 : f32
    %185 = vector.broadcast %cst_68 : f32 to vector<16x128xf32>
    %186 = arith.mulf %22, %185 : vector<16x128xf32>
    %cst_69 = arith.constant 1.250000e+00 : f32
    %187 = vector.broadcast %cst_69 : f32 to vector<16x128xf32>
    %188 = arith.mulf %24, %187 : vector<16x128xf32>
    %cst_70 = arith.constant 1.250000e+00 : f32
    %189 = vector.broadcast %cst_70 : f32 to vector<16x128xf32>
    %190 = arith.mulf %26, %189 : vector<16x128xf32>
    %cst_71 = arith.constant 1.250000e+00 : f32
    %191 = vector.broadcast %cst_71 : f32 to vector<16x128xf32>
    %192 = arith.mulf %28, %191 : vector<16x128xf32>
    %cst_72 = arith.constant 1.250000e+00 : f32
    %193 = vector.broadcast %cst_72 : f32 to vector<16x128xf32>
    %194 = arith.mulf %30, %193 : vector<16x128xf32>
    %cst_73 = arith.constant 1.250000e+00 : f32
    %195 = vector.broadcast %cst_73 : f32 to vector<16x128xf32>
    %196 = arith.mulf %32, %195 : vector<16x128xf32>
    %cst_74 = arith.constant 1.250000e+00 : f32
    %197 = vector.broadcast %cst_74 : f32 to vector<16x128xf32>
    %198 = arith.mulf %34, %197 : vector<16x128xf32>
    %cst_75 = arith.constant 1.250000e+00 : f32
    %199 = vector.broadcast %cst_75 : f32 to vector<16x128xf32>
    %200 = arith.mulf %36, %199 : vector<16x128xf32>
    %cst_76 = arith.constant 1.250000e+00 : f32
    %201 = vector.broadcast %cst_76 : f32 to vector<16x128xf32>
    %202 = arith.mulf %38, %201 : vector<16x128xf32>
    %203 = arith.mulf %184, %137 : vector<16x128xf32>
    %cst_77 = arith.constant 1.000000e+00 : f32
    %204 = vector.broadcast %cst_77 : f32 to vector<16x128xf32>
    %205 = arith.subf %204, %186 : vector<16x128xf32>
    %206 = arith.mulf %205, %142 : vector<16x128xf32>
    %207 = arith.addf %203, %206 : vector<16x128xf32>
    %208 = arith.mulf %186, %142 : vector<16x128xf32>
    %cst_78 = arith.constant 1.000000e+00 : f32
    %209 = vector.broadcast %cst_78 : f32 to vector<16x128xf32>
    %210 = arith.subf %209, %188 : vector<16x128xf32>
    %211 = arith.mulf %210, %147 : vector<16x128xf32>
    %212 = arith.addf %208, %211 : vector<16x128xf32>
    %213 = arith.mulf %188, %147 : vector<16x128xf32>
    %cst_79 = arith.constant 1.000000e+00 : f32
    %214 = vector.broadcast %cst_79 : f32 to vector<16x128xf32>
    %215 = arith.subf %214, %190 : vector<16x128xf32>
    %216 = arith.mulf %215, %152 : vector<16x128xf32>
    %217 = arith.addf %213, %216 : vector<16x128xf32>
    %218 = arith.mulf %190, %152 : vector<16x128xf32>
    %cst_80 = arith.constant 1.000000e+00 : f32
    %219 = vector.broadcast %cst_80 : f32 to vector<16x128xf32>
    %220 = arith.subf %219, %192 : vector<16x128xf32>
    %221 = arith.mulf %220, %157 : vector<16x128xf32>
    %222 = arith.addf %218, %221 : vector<16x128xf32>
    %223 = arith.mulf %192, %157 : vector<16x128xf32>
    %cst_81 = arith.constant 1.000000e+00 : f32
    %224 = vector.broadcast %cst_81 : f32 to vector<16x128xf32>
    %225 = arith.subf %224, %194 : vector<16x128xf32>
    %226 = arith.mulf %225, %162 : vector<16x128xf32>
    %227 = arith.addf %223, %226 : vector<16x128xf32>
    %228 = arith.mulf %194, %162 : vector<16x128xf32>
    %cst_82 = arith.constant 1.000000e+00 : f32
    %229 = vector.broadcast %cst_82 : f32 to vector<16x128xf32>
    %230 = arith.subf %229, %196 : vector<16x128xf32>
    %231 = arith.mulf %230, %167 : vector<16x128xf32>
    %232 = arith.addf %228, %231 : vector<16x128xf32>
    %233 = arith.mulf %196, %167 : vector<16x128xf32>
    %cst_83 = arith.constant 1.000000e+00 : f32
    %234 = vector.broadcast %cst_83 : f32 to vector<16x128xf32>
    %235 = arith.subf %234, %198 : vector<16x128xf32>
    %236 = arith.mulf %235, %172 : vector<16x128xf32>
    %237 = arith.addf %233, %236 : vector<16x128xf32>
    %238 = arith.mulf %198, %172 : vector<16x128xf32>
    %cst_84 = arith.constant 1.000000e+00 : f32
    %239 = vector.broadcast %cst_84 : f32 to vector<16x128xf32>
    %240 = arith.subf %239, %200 : vector<16x128xf32>
    %241 = arith.mulf %240, %177 : vector<16x128xf32>
    %242 = arith.addf %238, %241 : vector<16x128xf32>
    %243 = arith.mulf %200, %177 : vector<16x128xf32>
    %cst_85 = arith.constant 1.000000e+00 : f32
    %244 = vector.broadcast %cst_85 : f32 to vector<16x128xf32>
    %245 = arith.subf %244, %202 : vector<16x128xf32>
    %246 = arith.mulf %245, %182 : vector<16x128xf32>
    %247 = arith.addf %243, %246 : vector<16x128xf32>
    %cst_86 = arith.constant 0.833333313 : f32
    %248 = vector.broadcast %cst_86 : f32 to vector<16x128xf32>
    %249 = arith.mulf %20, %248 : vector<16x128xf32>
    %cst_87 = arith.constant 0.833333313 : f32
    %250 = vector.broadcast %cst_87 : f32 to vector<16x128xf32>
    %251 = arith.mulf %22, %250 : vector<16x128xf32>
    %cst_88 = arith.constant 0.833333313 : f32
    %252 = vector.broadcast %cst_88 : f32 to vector<16x128xf32>
    %253 = arith.mulf %24, %252 : vector<16x128xf32>
    %cst_89 = arith.constant 0.833333313 : f32
    %254 = vector.broadcast %cst_89 : f32 to vector<16x128xf32>
    %255 = arith.mulf %26, %254 : vector<16x128xf32>
    %cst_90 = arith.constant 0.833333313 : f32
    %256 = vector.broadcast %cst_90 : f32 to vector<16x128xf32>
    %257 = arith.mulf %28, %256 : vector<16x128xf32>
    %cst_91 = arith.constant 0.833333313 : f32
    %258 = vector.broadcast %cst_91 : f32 to vector<16x128xf32>
    %259 = arith.mulf %30, %258 : vector<16x128xf32>
    %cst_92 = arith.constant 0.833333313 : f32
    %260 = vector.broadcast %cst_92 : f32 to vector<16x128xf32>
    %261 = arith.mulf %32, %260 : vector<16x128xf32>
    %cst_93 = arith.constant 0.833333313 : f32
    %262 = vector.broadcast %cst_93 : f32 to vector<16x128xf32>
    %263 = arith.mulf %34, %262 : vector<16x128xf32>
    %cst_94 = arith.constant 0.833333313 : f32
    %264 = vector.broadcast %cst_94 : f32 to vector<16x128xf32>
    %265 = arith.mulf %36, %264 : vector<16x128xf32>
    %266 = arith.mulf %249, %207 : vector<16x128xf32>
    %cst_95 = arith.constant 1.000000e+00 : f32
    %267 = vector.broadcast %cst_95 : f32 to vector<16x128xf32>
    %268 = arith.subf %267, %251 : vector<16x128xf32>
    %269 = arith.mulf %268, %212 : vector<16x128xf32>
    %270 = arith.addf %266, %269 : vector<16x128xf32>
    %271 = arith.mulf %251, %212 : vector<16x128xf32>
    %cst_96 = arith.constant 1.000000e+00 : f32
    %272 = vector.broadcast %cst_96 : f32 to vector<16x128xf32>
    %273 = arith.subf %272, %253 : vector<16x128xf32>
    %274 = arith.mulf %273, %217 : vector<16x128xf32>
    %275 = arith.addf %271, %274 : vector<16x128xf32>
    %276 = arith.mulf %253, %217 : vector<16x128xf32>
    %cst_97 = arith.constant 1.000000e+00 : f32
    %277 = vector.broadcast %cst_97 : f32 to vector<16x128xf32>
    %278 = arith.subf %277, %255 : vector<16x128xf32>
    %279 = arith.mulf %278, %222 : vector<16x128xf32>
    %280 = arith.addf %276, %279 : vector<16x128xf32>
    %281 = arith.mulf %255, %222 : vector<16x128xf32>
    %cst_98 = arith.constant 1.000000e+00 : f32
    %282 = vector.broadcast %cst_98 : f32 to vector<16x128xf32>
    %283 = arith.subf %282, %257 : vector<16x128xf32>
    %284 = arith.mulf %283, %227 : vector<16x128xf32>
    %285 = arith.addf %281, %284 : vector<16x128xf32>
    %286 = arith.mulf %257, %227 : vector<16x128xf32>
    %cst_99 = arith.constant 1.000000e+00 : f32
    %287 = vector.broadcast %cst_99 : f32 to vector<16x128xf32>
    %288 = arith.subf %287, %259 : vector<16x128xf32>
    %289 = arith.mulf %288, %232 : vector<16x128xf32>
    %290 = arith.addf %286, %289 : vector<16x128xf32>
    %291 = arith.mulf %259, %232 : vector<16x128xf32>
    %cst_100 = arith.constant 1.000000e+00 : f32
    %292 = vector.broadcast %cst_100 : f32 to vector<16x128xf32>
    %293 = arith.subf %292, %261 : vector<16x128xf32>
    %294 = arith.mulf %293, %237 : vector<16x128xf32>
    %295 = arith.addf %291, %294 : vector<16x128xf32>
    %296 = arith.mulf %261, %237 : vector<16x128xf32>
    %cst_101 = arith.constant 1.000000e+00 : f32
    %297 = vector.broadcast %cst_101 : f32 to vector<16x128xf32>
    %298 = arith.subf %297, %263 : vector<16x128xf32>
    %299 = arith.mulf %298, %242 : vector<16x128xf32>
    %300 = arith.addf %296, %299 : vector<16x128xf32>
    %301 = arith.mulf %263, %242 : vector<16x128xf32>
    %cst_102 = arith.constant 1.000000e+00 : f32
    %302 = vector.broadcast %cst_102 : f32 to vector<16x128xf32>
    %303 = arith.subf %302, %265 : vector<16x128xf32>
    %304 = arith.mulf %303, %247 : vector<16x128xf32>
    %305 = arith.addf %301, %304 : vector<16x128xf32>
    %306 = arith.truncf %270 : vector<16x128xf32> to vector<16x128xbf16>
    %c0_103 = arith.constant 0 : index
    %c128 = arith.constant 128 : index
    %307 = vector.load %arg8[%c0_103, %c128] : memref<16x1152xbf16, #tpu.memory_space<vmem>>, vector<16x128xbf16>
    tpu.vector_store %arg8[%c0_103, %c128], %306 {strides = array<i32>} : memref<16x1152xbf16, #tpu.memory_space<vmem>>, vector<16x128xbf16>,
    %308 = arith.truncf %275 : vector<16x128xf32> to vector<16x128xbf16>
    %c0_104 = arith.constant 0 : index
    %c256 = arith.constant 256 : index
    %309 = vector.load %arg8[%c0_104, %c256] : memref<16x1152xbf16, #tpu.memory_space<vmem>>, vector<16x128xbf16>
    tpu.vector_store %arg8[%c0_104, %c256], %308 {strides = array<i32>} : memref<16x1152xbf16, #tpu.memory_space<vmem>>, vector<16x128xbf16>,
    %310 = arith.truncf %280 : vector<16x128xf32> to vector<16x128xbf16>
    %c0_105 = arith.constant 0 : index
    %c384 = arith.constant 384 : index
    %311 = vector.load %arg8[%c0_105, %c384] : memref<16x1152xbf16, #tpu.memory_space<vmem>>, vector<16x128xbf16>
    tpu.vector_store %arg8[%c0_105, %c384], %310 {strides = array<i32>} : memref<16x1152xbf16, #tpu.memory_space<vmem>>, vector<16x128xbf16>,
    %312 = arith.truncf %285 : vector<16x128xf32> to vector<16x128xbf16>
    %c0_106 = arith.constant 0 : index
    %c512 = arith.constant 512 : index
    %313 = vector.load %arg8[%c0_106, %c512] : memref<16x1152xbf16, #tpu.memory_space<vmem>>, vector<16x128xbf16>
    tpu.vector_store %arg8[%c0_106, %c512], %312 {strides = array<i32>} : memref<16x1152xbf16, #tpu.memory_space<vmem>>, vector<16x128xbf16>,
    %314 = arith.truncf %290 : vector<16x128xf32> to vector<16x128xbf16>
    %c0_107 = arith.constant 0 : index
    %c640 = arith.constant 640 : index
    %315 = vector.load %arg8[%c0_107, %c640] : memref<16x1152xbf16, #tpu.memory_space<vmem>>, vector<16x128xbf16>
    tpu.vector_store %arg8[%c0_107, %c640], %314 {strides = array<i32>} : memref<16x1152xbf16, #tpu.memory_space<vmem>>, vector<16x128xbf16>,
    %316 = arith.truncf %295 : vector<16x128xf32> to vector<16x128xbf16>
    %c0_108 = arith.constant 0 : index
    %c768 = arith.constant 768 : index
    %317 = vector.load %arg8[%c0_108, %c768] : memref<16x1152xbf16, #tpu.memory_space<vmem>>, vector<16x128xbf16>
    tpu.vector_store %arg8[%c0_108, %c768], %316 {strides = array<i32>} : memref<16x1152xbf16, #tpu.memory_space<vmem>>, vector<16x128xbf16>,
    %318 = arith.truncf %300 : vector<16x128xf32> to vector<16x128xbf16>
    %c0_109 = arith.constant 0 : index
    %c896 = arith.constant 896 : index
    %319 = vector.load %arg8[%c0_109, %c896] : memref<16x1152xbf16, #tpu.memory_space<vmem>>, vector<16x128xbf16>
    tpu.vector_store %arg8[%c0_109, %c896], %318 {strides = array<i32>} : memref<16x1152xbf16, #tpu.memory_space<vmem>>, vector<16x128xbf16>,
    %320 = arith.truncf %305 : vector<16x128xf32> to vector<16x128xbf16>
    %c0_110 = arith.constant 0 : index
    %c1024 = arith.constant 1024 : index
    %321 = vector.load %arg8[%c0_110, %c1024] : memref<16x1152xbf16, #tpu.memory_space<vmem>>, vector<16x128xbf16>
    tpu.vector_store %arg8[%c0_110, %c1024], %320 {strides = array<i32>} : memref<16x1152xbf16, #tpu.memory_space<vmem>>, vector<16x128xbf16>,
    %c0_111 = arith.constant 0 : index
    %c0_112 = arith.constant 0 : index
    %322 = vector.load %arg8[%c0_111, %c0_112] : memref<16x1152xbf16, #tpu.memory_space<vmem>>, vector<16x1152xbf16>
    %c0_113 = arith.constant 0 : index
    %c0_114 = arith.constant 0 : index
    %c0_115 = arith.constant 0 : index
    %323 = vector.load %arg5[%c0_113, %c0_114, %c0_115] : memref<1x1152x128xbf16, #tpu.memory_space<vmem>>, vector<1x1152x128xbf16>
    %324 = vector.shape_cast %323 : vector<1x1152x128xbf16> to vector<1152x128xbf16>
    %cst_116 = arith.constant dense<0.000000e+00> : vector<16x128xf32>
    %325 = tpu.matmul %322, %324, %cst_116 {dimension_numbers = #tpu.dot_dimension_numbers<[1], [0], [0], [1], [0, 0, 1, 1], [], []>} : vector<16x1152xbf16>, vector<1152x128xbf16>, vector<16x128xf32> -> vector<16x128xf32>
    %326 = arith.truncf %325 : vector<16x128xf32> to vector<16x128xbf16>
    %c0_117 = arith.constant 0 : index
    %c0_118 = arith.constant 0 : index
    %327 = vector.load %arg7[%c0_117, %c0_118] : memref<16x128xbf16, #tpu.memory_space<vmem>>, vector<16x128xbf16>
    tpu.vector_store %arg7[%c0_117, %c0_118], %326 {strides = array<i32>} : memref<16x128xbf16, #tpu.memory_space<vmem>>, vector<16x128xbf16>,
    %c2_i32 = arith.constant 2 : i32
    %328 = arith.cmpi eq, %arg1, %c2_i32 : i32
    %329 = arith.extui %328 : i1 to i32
    %c0_i32_119 = arith.constant 0 : i32
    %330 = arith.cmpi ne, %329, %c0_i32_119 : i32
    scf.if %330 {
      %c0_120 = arith.constant 0 : index
      %c0_121 = arith.constant 0 : index
      %331 = vector.load %arg6[%c0_120, %c0_121] : memref<16x128xf32, #tpu.memory_space<vmem>>, vector<16x128xf32>
      tpu.vector_store %arg6[%c0_120, %c0_121], %325 {strides = array<i32>} : memref<16x128xf32, #tpu.memory_space<vmem>>, vector<16x128xf32>,
    } else {
    }
    return
  }
  func.func @transform_0(%arg0: i32, %arg1: i32) -> (i32, i32) {
    %c0_i32 = arith.constant 0 : i32
    %c0_i32_0 = arith.constant 0 : i32
    return %arg0, %c0_i32 : i32, i32
  }
  func.func @transform_1(%arg0: i32, %arg1: i32) -> (i32, i32, i32) {
    %c0_i32 = arith.constant 0 : i32
    %c0_i32_0 = arith.constant 0 : i32
    %c0_i32_1 = arith.constant 0 : i32
    return %arg1, %c0_i32, %c0_i32_0 : i32, i32, i32
  }
  func.func @transform_2(%arg0: i32, %arg1: i32) -> (i32, i32, i32) {
    %c0_i32 = arith.constant 0 : i32
    %c0_i32_0 = arith.constant 0 : i32
    %c0_i32_1 = arith.constant 0 : i32
    return %arg1, %c0_i32, %c0_i32_0 : i32, i32, i32
  }
  func.func @transform_3(%arg0: i32, %arg1: i32) -> (i32, i32, i32) {
    %c0_i32 = arith.constant 0 : i32
    %c0_i32_0 = arith.constant 0 : i32
    %c0_i32_1 = arith.constant 0 : i32
    return %arg1, %c0_i32, %c0_i32_0 : i32, i32, i32
  }
  func.func @transform_4(%arg0: i32, %arg1: i32) -> (i32, i32) {
    %c0_i32 = arith.constant 0 : i32
    %c0_i32_0 = arith.constant 0 : i32
    return %arg0, %c0_i32 : i32, i32
  }
}

</mosaic_0001>

<bundles_post_ra>
// kernel: tpu_custom_call.1
= control target key start
LH: loop header
LB: loop body
LE: loop exit
PB: predicated region body
PF: predicated region fallthrough
CT: control target
= control target key end

     0   :  { %9 = vsyncpa [#allocation5], 0  ;;  %s3392_s0 = inlined_call_operand.hbm [shape: bf16[16,128], index: 0, kind: input, shape index: {}]   ;;  %s3393_s1 = inlined_call_operand.hbm [shape: bf16[3,128,128], index: 1, kind: input, shape index: {}]   ;;  %s3394_s2 = inlined_call_operand.vmem [shape: f32[3,1,128], index: 2, kind: input, shape index: {}]   ;;  %s3395_s3 = inlined_call_operand.hbm [shape: bf16[3,1152,128], index: 3, kind: input, shape index: {}]   ;;  %s3396_s4 = inlined_call_operand.hbm [shape: f32[16,128], index: 4, kind: output, shape index: {}]  }
   0x1   :  { %10 = vsyncpa [#allocation8], 0 }
   0x2   :  { %12 = vsyncpa [#allocation8 + $0x1], 0 }
   0x3   :  { %13 = vsyncpa [#allocation6], 0  ;;  %s2684_s15 = smov 0   ;;  %s2686_s16 = smov 0  }
   0x4   :  { %s2688_s17 = smov 0   ;;  %s2690_s18 = smov 0  }
   0x5   :  { %s2692_s19 = smov 0   ;;  %s2694_s20 = smov 0  }
   0x6 LB: > { %s28_s21 = sadd.s32 1, %s2642_s19  ;;  %s64_s22 = sadd.s32 1, %s2634_s17  ;;  %s2646_s20 = sphi %s2694_s20, %s19_s20   ;;  %s2642_s19 = sphi %s2692_s19, %s3432_s19   ;;  %s2638_s18 = sphi %s2690_s18, %s3431_s18   ;;  %s2634_s17 = sphi %s2688_s17, %s3430_s17   ;;  %s2630_s16 = sphi %s2686_s16, %s3429_s16   ;;  %s2626_s15 = sphi %s2684_s15, %s3428_s15  }
   0x7   : > { %p29_p0 = scmp.ge.s32.totalorder %s28_s21, 3  ;;  %p71_p1 = scmp.ne.s32.totalorder %s2634_s17, %s2630_s16 }
   0x8   : > { %p72_p2 = scmp.eq.s32.totalorder %s2646_s20, 0  ;;  %p2328_p5 = scmp.lt.s32.totalorder %s2646_s20, 3 }
   0x9   : > { %s3434_s21 = smov (%p29_p0, %s28_s21), 0  ;;  %s195_s25 = sand.u32 1, %s2646_s20  }
   0xa   : > { %p2721_p3 = por %p72_p2, %p71_p1  ;;  %s61_s24 = ssub.s32 %s2642_s19, %s3434_s21 }
   0xb   : > { %p62_p4 = scmp.eq.s32.totalorder %s61_s24, 0  ;;  %s197_s26 = sand.u32 1, %s2634_s17  }
   0xc   : > { %s1915_s28 = sshll.u32 %s197_s26, 6  ;;  %s2087_s29 = sshll.u32 %s2642_s19, 10 }
   0xd   : > { %s2731_s27 = scalar_select %p62_p4, %s2634_s17, %s64_s22  }
   0xe   : > { %s205_s6 = scalar_lea.hbm %s3393_s1, %s2087_s29  ;;  %s199_s7 = scalar_lea.vmem [#allocation7], %s1915_s28 }
   0xf   : > { %s206_s8 = sshll.u32 %s199_s7, 4  ;;  %p2739_p6 = pnand %p2328_p5, %p2721_p3  ;;  %s207_s8 = int_to_ptr.vmem [resolvable:$true] %s206_s8 }
  0x10   : > { %s2743_s10 = smul.u32 576, %s197_s26  ;;  %s2745_s11 = scalar_lea.sflag [#allocation8], %s195_s25 }
  0x11   : > { %p2484_p7 = pneg %p2739_p6  ;;  %s2495_s12 = scalar_lea.vmem %s207_s8, 1024 }
  0x12   : > { %p2496_p8 = scmp.ne.s32.totalorder %s207_s8, %s2495_s12  ;;  %s2648_s13 = smov [#allocation7]  }
  0x13   : > { %s2500_s14 = sshll.u32 %s2648_s13, 4  ;;  %s2501_s14 = int_to_ptr.vmem [resolvable:$false] %s2500_s14 }
  0x14   : > { %p2498_p9 = pnand %p2496_p8, %p2484_p7  ;;  %s2502_s22 = scalar_lea.vmem %s2501_s14, 2048 }
  0x15   : > { %p2503_p11 = scmp.lt.s32.totalorder %s207_s8, %s2501_s14  ;;  %p2504_p12 = scmp.lt.s32.totalorder %s2502_s22, %s2495_s12 }
  0x16   : > { %p2499_p10 = pneg %p2498_p9 }
  0x17   : > { %p2505_p13 = por %p2504_p12, %p2503_p11 }
  0x19   : > { %p2506_p0 = pnand %p2505_p13, %p2499_p10 }
  0x1b   : > { %2509 = shalt.err (!%p2506_p0)
}
  0x1c   : > { %s3397_s23 = smov 64   ;;  %s2650_s24 = smov 4  }
  0x1d   : > { %2323 = dma.hbm_to_vmem [thread:$0]  (!%p2739_p6), %s205_s6, 1024, %s207_s8, %s2745_s11, %s3397_s23, %s3397_s23, %s2650_s24  }
  0x1e   : > { %s2759_s25 = sadd.s32 4294967295, %s2646_s20   ;;  %p77_p1 = scmp.ne.s32.totalorder %s2630_s16, %s2626_s15 }
  0x1f   : > { %p78_p2 = scmp.eq.s32.totalorder %s2759_s25, 0  ;;  %p1912_p3 = scmp.ge.s32.totalorder %s2646_s20, 1 }
  0x20   : > { %p166_p4 = scmp.lt.s32.totalorder %s2646_s20, 4  ;;  %s2651_s29 = smov [#allocation4]  }
  0x21   : > { %p2768_p5 = por %p78_p2, %p77_p1  ;;  %s181_s30 = sshll.u32 %s2651_s29, 4  ;;  %s2779_s30 = int_to_ptr.vmem [resolvable:$true] %s181_s30 }
  0x22   : > { %p2772_p8 = pnand %p1912_p3, %p166_p4  ;;  %s2302_s5 = smul.u32 9216, %s2642_s19 }
  0x23   : > { %s226_s8 = scalar_lea.vmem [#allocation9], %s2743_s10  ;;  %s2652_s22 = smov [#allocation9]  }
  0x24   : > { %p2316_p9 = pneg %p2772_p8  ;;  %s232_s7 = scalar_lea.hbm %s3395_s3, %s2302_s5 }
  0x25   : > { %s233_s12 = sshll.u32 %s226_s8, 4  ;;  %s2528_s29 = sshll.u32 %s2652_s22, 4  ;;  %s234_s12 = int_to_ptr.vmem [resolvable:$true] %s233_s12  ;;  %s2529_s29 = int_to_ptr.vmem [resolvable:$false] %s2528_s29 }
  0x26   : > { %p2787_p10 = pnand %p2316_p9, %p78_p2  ;;  %s2523_s14 = scalar_lea.vmem %s234_s12, 9216 }
  0x27   : > { %p2524_p11 = scmp.ne.s32.totalorder %s234_s12, %s2523_s14  ;;  %s2530_s23 = scalar_lea.vmem %s2529_s29, 18432 }
  0x28   : > { %p2531_p0 = scmp.lt.s32.totalorder %s234_s12, %s2529_s29  ;;  %p2532_p1 = scmp.lt.s32.totalorder %s2530_s23, %s2523_s14 }
  0x29   : > { %p2526_p12 = pnand %p2524_p11, %p2484_p7 }
  0x2a   : > { %p2533_p3 = por %p2532_p1, %p2531_p0 }
  0x2b   : > { %p2527_p13 = pneg %p2526_p12 }
  0x2d   : > { %p2534_p4 = pnand %p2533_p3, %p2527_p13 }
  0x2f   : > { %2537 = shalt.err (!%p2534_p4)
}
  0x30   : > { %s3413_s10 = smov 64   ;;  %p2540_p7 = pneg %p2787_p10 }
  0x31   : > { %2326 = dma.hbm_to_vmem [thread:$0]  (!%p2739_p6), %s232_s7, 9216, %s234_s12, %s2745_s11, %s3413_s10, %s3413_s10, %s2650_s24  }
  0x32   : > { %s2549_s5 = scalar_lea.vmem %s2779_s30, 128  ;;  %p2557_p13 = scmp.lt.s32.totalorder %s2779_s30, %s2779_s30 }
  0x33   : > { %p2550_p9 = scmp.ne.s32.totalorder %s2779_s30, %s2549_s5  ;;  %p2558_p0 = scmp.lt.s32.totalorder %s2549_s5, %s2549_s5 }
  0x35   : > { %p2552_p11 = pnand %p2550_p9, %p2540_p7  ;;  %p2559_p1 = por %p2558_p0, %p2557_p13 }
  0x37   : > { %p2553_p12 = pneg %p2552_p11 }
  0x39   : > { %p2560_p3 = pnand %p2559_p1, %p2553_p12 }
  0x3b   : > { %2563 = shalt.err (!%p2560_p3)
}
  0x3c   : > { %2319 = dma.hbm_to_vmem [thread:$0]  (!%p2787_p10), %s3392_s0, 128, %s2779_s30, [#allocation5], %s3413_s10, %s3413_s10, %s2650_s24  }
  0x3d   : > { %245 = sbr.rel (%p2772_p8) target bundleno = 711 (0x2c7), region = 36 }
  0x42   : > { %2613 = dma.done.wait (%p78_p2), [#allocation5], 128  }
  0x43   : > { %2615 = vsyncadd (%p78_p2), [#allocation5], 4294967168  ;;  %s251_s23 = sand.u32 1, %s2759_s25   ;;  %s253_s15 = sand.u32 1, %s2630_s16  }
  0x44   : > { %s1921_s6 = sshll.u32 %s253_s15, 6  ;;  %s252_s7 = scalar_lea.sflag [#allocation8], %s251_s23 }
  0x45   : > { %s2823_s8 = scalar_lea.vmem [#allocation7], %s1921_s6 }
  0x46   : > { %2617 = dma.done.wait (%p2768_p5), %s252_s7, 10240  }
  0x47   : > { %2619 = vsyncadd (%p2768_p5), %s252_s7, 4294957056  ;;  %s2303_s24 = smul.u32 576, %s253_s15  ;;  %p293_p6 = scmp.lt.s32.totalorder %s2638_s18, 2 }
  0x48   : > { %p1922_p2 = scmp.ne.s32.totalorder %s2638_s18, 0 }
  0x49   : > { %s2831_s28 = scalar_select %p293_p6, %s2638_s18, 2 }
  0x4a   : > { %s2837_s14 = scalar_lea.vmem [#allocation9], %s2303_s24  ;;  %301 = sbr.rel (%p1922_p2) target bundleno = 81 (0x51), region = 52 }
  0x4b   : > { %s295_s13 = scalar_lea.vmem %s3394_s2, %s2831_s28 }
  0x4f   : > { %v302_v0 = vld [vmem:[#allocation4] sm:$0xff]  }
  0x50   : > { %304 = vst [vmem:[#allocation2] sm:$0xff] %v302_v0  }
  0x51 PF: > { %v2389_v1 = vld [vmem:[%s2823_s8 + $0x38] sm:$0xff]   ;;  %v3400_v2 = vmov 0.0   ;;  %v2390_v3 = vld [vmem:[%s2823_s8 + $0x30] sm:$0xff]   ;;  %vm3399_vm0 = vmmov 0   ;;  %v2391_v4 = vld [vmem:[%s2823_s8 + $0x28] sm:$0xff]   ;;  %vm2655_vm4 = vmmov 1  }
  0x52   : > { %2261 = vmatprep.subr.bf16.mxu0 %v3400_v2  ;;  %2277 = vmatprep.mubr.msk.bf16.mxu0 %vm3399_vm0, %v3400_v2  ;;  %v2392_v5 = vld [vmem:[%s2823_s8 + $0x20] sm:$0xff]   ;;  %v2393_v6 = vld [vmem:[%s2823_s8 + $0x18] sm:$0xff]   ;;  %v2394_v7 = vld [vmem:[%s2823_s8 + $0x10] sm:$0xff]   ;;  %p2082_p5 = scmp.ne.s32.totalorder %s2638_s18, 2 }
  0x53   : > { %2262 = vmatpush3.bf16.msra.mxu0 %v2389_v1  ;;  %v2395_v8 = vld [vmem:[%s2823_s8 + $0x8] sm:$0xff]   ;;  %v2396_v9 = vld [vmem:[%s2823_s8] sm:$0xff]   ;;  %v2398_v11 = vld [vmem:[%s2837_s14 + $0xf8] sm:$0xff]  }
  0x54   : > { %2263 = vmatprep.subr.bf16.mxu0 %v3400_v2  ;;  %v2399_v12 = vld [vmem:[%s2837_s14 + $0xb8] sm:$0xff]   ;;  %v2400_v13 = vld [vmem:[%s2837_s14 + $0xf0] sm:$0xff]   ;;  %v2402_v15 = vld [vmem:[%s2837_s14 + $0xe8] sm:$0xff]  }
  0x55   : > { %v2401_v14 = vld [vmem:[%s2837_s14 + $0xb0] sm:$0xff]   ;;  %v2406_v16 = vld [vmem:[%s2837_s14 + $0x78] sm:$0xff]   ;;  %v2403_v19 = vld [vmem:[%s2837_s14 + $0xa8] sm:$0xff]  }
  0x56   : > { %v2408_v17 = vld [vmem:[%s2837_s14 + $0x38] sm:$0xff]   ;;  %v2410_v18 = vld [vmem:[%s2837_s14 + $0x70] sm:$0xff]   ;;  %2164 = vmatprep.subr.bf16.mxu1 %v2406_v16  ;;  %v2404_v20 = vld [vmem:[%s2837_s14 + $0xe0] sm:$0xff]  }
  0x57   : > { %2264 = vmatpush3.bf16.msra.mxu0 %v2390_v3  ;;  %v2397_v10 = vld [vmem:[#allocation2] sm:$0xff]   ;;  %2165 = vmatpush3.bf16.msra.mxu1 %v2408_v17  ;;  %v2412_v21 = vld [vmem:[%s2837_s14 + $0x30] sm:$0xff]   ;;  %v2405_v23 = vld [vmem:[%s2837_s14 + $0xa0] sm:$0xff]  }
  0x58   : > { %2265 = vmatprep.subr.bf16.mxu0 %v3400_v2  ;;  %2166 = vmatprep.subr.bf16.mxu1 %v2410_v18  ;;  %v2414_v22 = vld [vmem:[%s2837_s14 + $0x68] sm:$0xff]   ;;  %v2407_v24 = vld [vmem:[%s2837_s14 + $0xd8] sm:$0xff]   ;;  %v2418_v26 = vld [vmem:[%s2837_s14 + $0x60] sm:$0xff]  }
  0x59   : > { %v2416_v25 = vld [vmem:[%s2837_s14 + $0x28] sm:$0xff]   ;;  %v2409_v27 = vld [vmem:[%s2837_s14 + $0x98] sm:$0xff]   ;;  %v2411_v28 = vld [vmem:[%s2837_s14 + $0xd0] sm:$0xff]  }
  0x5a   : > { %v2420_v29 = vld [vmem:[%s2837_s14 + $0x20] sm:$0xff]   ;;  %v2422_v30 = vld [vmem:[%s2837_s14 + $0x58] sm:$0xff]   ;;  %v2413_v31 = vld [vmem:[%s2837_s14 + $0x90] sm:$0xff]  }
  0x5b   : > { %2266 = vmatpush3.bf16.msra.mxu0 %v2391_v4  ;;  %2167 = vmatpush3.bf16.msra.mxu1 %v2412_v21  ;;  %v2415_v32 = vld [vmem:[%s2837_s14 + $0xc8] sm:$0xff]   ;;  %v2419_v34 = vld [vmem:[%s2837_s14 + $0xc0] sm:$0xff]   ;;  %v2423_v36 = vld [vmem:[%s2837_s14 + $0x1f8] sm:$0xff]  }
  0x5c   : > { %2267 = vmatprep.subr.bf16.mxu0 %v3400_v2  ;;  %2168 = vmatprep.subr.bf16.mxu1 %v2414_v22  ;;  %v2417_v33 = vld [vmem:[%s2837_s14 + $0x88] sm:$0xff]   ;;  %v2421_v35 = vld [vmem:[%s2837_s14 + $0x80] sm:$0xff]   ;;  %v2424_v37 = vld [vmem:[%s2837_s14 + $0x18] sm:$0xff]  }
  0x5d   : > { %v2426_v38 = vld [vmem:[%s2837_s14 + $0x50] sm:$0xff]   ;;  %v2430_v40 = vld [vmem:[%s2837_s14 + $0x48] sm:$0xff]   ;;  %v2434_v42 = vld [vmem:[%s2837_s14 + $0x40] sm:$0xff]  }
  0x5e   : > { %v2428_v39 = vld [vmem:[%s2837_s14 + $0x10] sm:$0xff]   ;;  %v2432_v41 = vld [vmem:[%s2837_s14 + $0x8] sm:$0xff]   ;;  %v2436_v43 = vld [vmem:[%s2837_s14] sm:$0xff]  }
  0x5f   : > { %2268 = vmatpush3.bf16.msra.mxu0 %v2392_v5  ;;  %2169 = vmatpush3.bf16.msra.mxu1 %v2416_v25  ;;  %v2441_v44 = vld [vmem:[%s2837_s14 + $0x178] sm:$0xff]   ;;  %v1923_v45 = vld [vmem:[%s295_s13] ss:$0 sm:$0xff] }
  0x60   : > { %2269 = vmatprep.subr.bf16.mxu0 %v3400_v2  ;;  %2170 = vmatprep.subr.bf16.mxu1 %v2418_v26 }
  0x63   : > { %2270 = vmatpush3.bf16.msra.mxu0 %v2393_v6  ;;  %2171 = vmatpush3.bf16.msra.mxu1 %v2420_v29 }
  0x64   : > { %2271 = vmatprep.subr.bf16.mxu0 %v3400_v2  ;;  %2172 = vmatprep.subr.bf16.mxu1 %v2422_v30 }
  0x67   : > { %2272 = vmatpush3.bf16.msra.mxu0 %v2394_v7  ;;  %2173 = vmatpush3.bf16.msra.mxu1 %v2424_v37 }
  0x68   : > { %2273 = vmatprep.subr.bf16.mxu0 %v3400_v2  ;;  %2174 = vmatprep.subr.bf16.mxu1 %v2426_v38 }
  0x6b   : > { %2274 = vmatpush3.bf16.msra.mxu0 %v2395_v8  ;;  %2175 = vmatpush3.bf16.msra.mxu1 %v2428_v39 }
  0x6c   : > { %2275 = vmatprep.subr.bf16.mxu0 %v3400_v2  ;;  %2176 = vmatprep.subr.bf16.mxu1 %v2430_v40 }
  0x6f   : > { %2276 = vmatpush3.bf16.msra.mxu0 %v2396_v9  ;;  %2177 = vmatpush3.bf16.msra.mxu1 %v2432_v41 }
  0x70   : > { %2186 = vmatprep.subr.bf16.mxu0 %v2398_v11  ;;  %2178 = vmatprep.subr.bf16.mxu1 %v2434_v42 }
  0x72   : > { %2278 = vmatmul.mubr.bf16.vlgmr.msra.gmra.mxu0 %v2397_v10 }
  0x73   : > { %2187 = vmatpush3.bf16.msra.mxu0 %v2399_v12  ;;  %2179 = vmatpush3.bf16.msra.mxu1 %v2436_v43 }
  0x74   : > { %2188 = vmatprep.subr.bf16.mxu0 %v2400_v13  ;;  %2208 = vmatprep.subr.bf16.mxu1 %v2441_v44 }
  0x77   : > { %2189 = vmatpush3.bf16.msra.mxu0 %v2401_v14 }
  0x78   : > { %2190 = vmatprep.subr.bf16.mxu0 %v2402_v15 }
  0x7b   : > { %2191 = vmatpush3.bf16.msra.mxu0 %v2403_v19 }
  0x7c   : > { %2192 = vmatprep.subr.bf16.mxu0 %v2404_v20 }
  0x7f   : > { %2193 = vmatpush3.bf16.msra.mxu0 %v2405_v23 }
  0x80   : > { %2194 = vmatprep.subr.bf16.mxu0 %v2407_v24 }
  0x83   : > { %2195 = vmatpush3.bf16.msra.mxu0 %v2409_v27 }
  0x84   : > { %2196 = vmatprep.subr.bf16.mxu0 %v2411_v28 }
  0x87   : > { %2197 = vmatpush3.bf16.msra.mxu0 %v2413_v31 }
  0x88   : > { %2198 = vmatprep.subr.bf16.mxu0 %v2415_v32 }
  0x8b   : > { %2199 = vmatpush3.bf16.msra.mxu0 %v2417_v33 }
  0x8c   : > { %2200 = vmatprep.subr.bf16.mxu0 %v2419_v34 }
  0x8f   : > { %2201 = vmatpush3.bf16.msra.mxu0 %v2421_v35 }
  0x90   : > { %2230 = vmatprep.subr.bf16.mxu0 %v2423_v36 }
 0x132   : > { %v419_v46 = vpop.f32.mrf.mxu0 }
 0x133   : > { %v2897_v47 = vadd.f32 %v1923_v45, %v419_v46 }
 0x134   : > { %v2279_v48 = vpop.f32.mrf.mxu0 }
 0x135   : > { %v2900_v49 = vadd.f32 1.8, %v2897_v47  ;;  %v2903_v50 = vadd.f32 1.4, %v2897_v47  ;;  %v2906_v51 = vadd.f32 1.0, %v2897_v47  ;;  %v2926_v58 = vadd.f32 -1.0, %v2897_v47 }
 0x136   : > { %v422_v52 = vpop.f32.mrf.mxu0  ;;  %v2909_v53 = vadd.f32 0.6, %v2897_v47  ;;  %v2912_v54 = vadd.f32 0.2, %v2897_v47  ;;  %v2920_v57 = vadd.f32 -0.2, %v2897_v47 }
 0x137   : > { %v2914_v55 = vadd.f32 %v1923_v45, %v422_v52  ;;  %vm476_vm1 = vcmp.ge.f32.partialorder %v2900_v49, 0.0  ;;  %vm478_vm2 = vcmp.ge.f32.partialorder %v2903_v50, 0.0  ;;  %vm480_vm3 = vcmp.ge.f32.partialorder %v2906_v51, 0.0  ;;  %3414 = vst [vmem:[#allocation14_spill] sm:$0xff] %v2926_v58 }
 0x138   : > { %v2280_v56 = vpop.f32.mrf.mxu0  ;;  %vm506_vm5 = vmxor %vm478_vm2, %vm2655_vm4  ;;  %vm482_vm7 = vcmp.ge.f32.partialorder %v2909_v53, 0.0  ;;  %vm484_vm11 = vcmp.ge.f32.partialorder %v2912_v54, 0.0  ;;  %v2961_v3 = vmul.f32 2.5, %v2900_v49  ;;  %v590_v10 = vmul.f32 2.5, %v2903_v50 }
 0x139   : > { %v2929_v59 = vadd.f32 2.2, %v2914_v55  ;;  %v2932_v60 = vadd.f32 1.8, %v2914_v55  ;;  %v2935_v61 = vadd.f32 1.4, %v2914_v55  ;;  %vm508_vm6 = vmand %vm476_vm1, %vm506_vm5 }
 0x13a   : > { %v2940_v62 = vadd.f32 1.0, %v2914_v55  ;;  %v2943_v63 = vadd.f32 0.6, %v2914_v55  ;;  %v2946_v0 = vadd.f32 0.2, %v2914_v55  ;;  %vm514_vm8 = vmxor %vm480_vm3, %vm2655_vm4  ;;  %v2956_v1 = vsel %vm508_vm6, 1.0, %v3400_v2 }
 0x13b   : > { %vm475_vm9 = vcmp.ge.f32.partialorder %v2929_v59, 0.0  ;;  %vm477_vm10 = vcmp.ge.f32.partialorder %v2932_v60, 0.0  ;;  %vm516_vm12 = vmand %vm478_vm2, %vm514_vm8  ;;  %v2964_v4 = vadd.f32 -0.2, %v2914_v55  ;;  %v2967_v5 = vadd.f32 -0.6, %v2914_v55 }
 0x13c   : > { %vm479_vm13 = vcmp.ge.f32.partialorder %v2935_v61, 0.0  ;;  %vm481_vm14 = vcmp.ge.f32.partialorder %v2940_v62, 0.0  ;;  %vm499_vm15 = vmxor %vm477_vm10, %vm2655_vm4  ;;  %vm483_vm5 = vcmp.ge.f32.partialorder %v2943_v63, 0.0  ;;  %vm485_vm2 = vcmp.ge.f32.partialorder %v2946_v0, 0.0 }
 0x13d   : > { %vm501_vm6 = vmand %vm475_vm9, %vm499_vm15  ;;  %v1965_v6 = vsel %vm516_vm12, 1.0, %v3400_v2  ;;  %v587_v7 = vmul.f32 2.5, %v2929_v59  ;;  %v589_v9 = vmul.f32 2.5, %v2932_v60  ;;  %v591_v11 = vmul.f32 2.5, %v2935_v61 }
 0x13e   : > { %v1962_v8 = vsel %vm501_vm6, 1.0, %v3400_v2  ;;  %vm507_vm8 = vmxor %vm479_vm13, %vm2655_vm4  ;;  %vm486_vm0 = vcmp.ge.f32.partialorder %v2920_v57, 0.0  ;;  %v592_v12 = vmul.f32 2.5, %v2906_v51  ;;  %v593_v13 = vmul.f32 2.5, %v2940_v62 }
 0x13f   : > { %vm509_vm9 = vmand %vm477_vm10, %vm507_vm8  ;;  %v594_v14 = vmul.f32 2.5, %v2909_v53  ;;  %v595_v15 = vmul.f32 2.5, %v2943_v63  ;;  %vm487_vm12 = vcmp.ge.f32.partialorder %v2964_v4, 0.0  ;;  %v2998_v17 = vmul.f32 2.5, %v2912_v54 }
 0x140   : > { %v1964_v16 = vsel %vm509_vm9, 1.0, %v3400_v2  ;;  %vm515_vm15 = vmxor %vm481_vm14, %vm2655_vm4  ;;  %v3001_v18 = vmul.f32 2.5, %v2946_v0  ;;  %v3004_v19 = vmul.f32 2.5, %v2964_v4  ;;  %v609_v20 = vmul.f32 %v1962_v8, %v587_v7 }
 0x141   : > { %vm517_vm10 = vmand %vm479_vm13, %vm515_vm15  ;;  %v611_v21 = vsub.f32 1.0, %v589_v9  ;;  %v616_v22 = vmul.f32 %v2956_v1, %v2961_v3  ;;  %v617_v23 = vmul.f32 %v1964_v16, %v589_v9  ;;  %v618_v25 = vsub.f32 1.0, %v590_v10 }
 0x142   : > { %v1966_v24 = vsel %vm517_vm10, 1.0, %v3400_v2  ;;  %vm522_vm6 = vmxor %vm482_vm7, %vm2655_vm4  ;;  %v619_v26 = vsub.f32 1.0, %v591_v11  ;;  %v624_v27 = vmul.f32 %v1965_v6, %v590_v10  ;;  %vm489_vm8 = vcmp.ge.f32.partialorder %v2967_v5, 0.0 }
 0x143   : > { %vm523_vm13 = vmxor %vm483_vm5, %vm2655_vm4  ;;  %v613_v28 = vmul.f32 %v1964_v16, %v611_v21  ;;  %v625_v29 = vmul.f32 %v1966_v24, %v591_v11  ;;  %v626_v30 = vsub.f32 1.0, %v592_v12  ;;  %v627_v31 = vsub.f32 1.0, %v593_v13 }
 0x144   : > { %vm524_vm9 = vmand %vm480_vm3, %vm522_vm6  ;;  %v620_v32 = vmul.f32 %v1965_v6, %v618_v25  ;;  %v621_v33 = vmul.f32 %v1966_v24, %v619_v26  ;;  %v634_v34 = vsub.f32 1.0, %v594_v14  ;;  %v635_v35 = vsub.f32 1.0, %v595_v15 }
 0x145   : > { %vm525_vm15 = vmand %vm481_vm14, %vm523_vm13  ;;  %v1967_v36 = vsel %vm524_vm9, 1.0, %v3400_v2  ;;  %v615_v37 = vadd.f32 %v613_v28, %v609_v20  ;;  %v642_v38 = vsub.f32 1.0, %v2998_v17  ;;  %v643_v39 = vsub.f32 1.0, %v3001_v18 }
 0x146   : > { %v1968_v40 = vsel %vm525_vm15, 1.0, %v3400_v2  ;;  %vm530_vm3 = vmxor %vm484_vm11, %vm2655_vm4  ;;  %v3029_v41 = vadd.f32 %v620_v32, %v616_v22  ;;  %v623_v42 = vadd.f32 %v621_v33, %v617_v23  ;;  %v628_v43 = vmul.f32 %v1967_v36, %v626_v30 }
 0x147   : > { %vm531_vm14 = vmxor %vm485_vm2, %vm2655_vm4  ;;  %v629_v44 = vmul.f32 %v1968_v40, %v627_v31  ;;  %v632_v45 = vmul.f32 %v1967_v36, %v592_v12  ;;  %v633_v46 = vmul.f32 %v1968_v40, %v593_v13  ;;  %v651_v48 = vsub.f32 1.0, %v3004_v19 }
 0x148   : > { %vm532_vm10 = vmand %vm482_vm7, %vm530_vm3  ;;  %v630_v52 = vadd.f32 %v628_v43, %v624_v27  ;;  %v689_v56 = vmul.f32 1.25, %v2929_v59  ;;  %v3039_v6 = vmul.f32 1.25, %v2900_v49  ;;  %v691_v7 = vmul.f32 1.25, %v2932_v60 }
 0x149   : > { %vm533_vm6 = vmand %vm483_vm5, %vm531_vm14  ;;  %v1969_v8 = vsel %vm532_vm10, 1.0, %v3400_v2  ;;  %v631_v9 = vadd.f32 %v629_v44, %v625_v29  ;;  %v692_v10 = vmul.f32 1.25, %v2903_v50  ;;  %v693_v11 = vmul.f32 1.25, %v2935_v61 }
 0x14a   : > { %v1970_v12 = vsel %vm533_vm6, 1.0, %v3400_v2  ;;  %vm538_vm7 = vmxor %vm486_vm0, %vm2655_vm4  ;;  %v636_v13 = vmul.f32 %v1969_v8, %v634_v34  ;;  %v640_v16 = vmul.f32 %v1969_v8, %v594_v14  ;;  %v694_v20 = vmul.f32 1.25, %v2906_v51 }
 0x14b   : > { %vm539_vm5 = vmxor %vm487_vm12, %vm2655_vm4  ;;  %v637_v21 = vmul.f32 %v1970_v12, %v635_v35  ;;  %v641_v22 = vmul.f32 %v1970_v12, %v595_v15  ;;  %v695_v23 = vmul.f32 1.25, %v2940_v62  ;;  %v3057_v24 = vmul.f32 1.25, %v2909_v53 }
 0x14c   : > { %vm540_vm13 = vmand %vm484_vm11, %vm538_vm7  ;;  %v638_v25 = vadd.f32 %v636_v13, %v632_v45  ;;  %v697_v26 = vmul.f32 1.25, %v2943_v63  ;;  %v3063_v14 = vmul.f32 1.25, %v2946_v0  ;;  %v709_v27 = vmul.f32 %v689_v56, %v615_v37 }
 0x14d   : > { %vm541_vm9 = vmand %vm485_vm2, %vm539_vm5  ;;  %v3068_v15 = vsel %vm540_vm13, 1.0, %v3400_v2  ;;  %v639_v28 = vadd.f32 %v637_v21, %v633_v46  ;;  %v711_v29 = vsub.f32 1.0, %v691_v7  ;;  %v716_v30 = vmul.f32 %v3039_v6, %v3029_v41 }
 0x14e   : > { %v1972_v31 = vsel %vm541_vm9, 1.0, %v3400_v2  ;;  %vm547_vm11 = vmxor %vm489_vm8, %vm2655_vm4  ;;  %v644_v32 = vmul.f32 %v3068_v15, %v642_v38  ;;  %v717_v33 = vmul.f32 %v691_v7, %v623_v42  ;;  %v718_v34 = vsub.f32 1.0, %v692_v10 }
 0x14f   : > { %vm549_vm2 = vmand %vm487_vm12, %vm547_vm11  ;;  %v645_v35 = vmul.f32 %v1972_v31, %v643_v39  ;;  %v649_v36 = vmul.f32 %v1972_v31, %v3001_v18  ;;  %v713_v37 = vmul.f32 %v711_v29, %v623_v42  ;;  %v719_v40 = vsub.f32 1.0, %v693_v11 }
 0x150   : > { %v3081_v43 = vsel %vm549_vm2, 1.0, %v3400_v2  ;;  %v3083_v44 = vadd.f32 %v644_v32, %v640_v16  ;;  %v720_v45 = vmul.f32 %v718_v34, %v630_v52  ;;  %v724_v46 = vmul.f32 %v692_v10, %v630_v52 }
 0x151   : > { %v647_v56 = vadd.f32 %v645_v35, %v641_v22  ;;  %v653_v38 = vmul.f32 %v3081_v43, %v651_v48  ;;  %v715_v7 = vadd.f32 %v713_v37, %v709_v27  ;;  %v721_v8 = vmul.f32 %v719_v40, %v631_v9 }
 0x152   : > { %v3086_v12 = vadd.f32 %v720_v45, %v716_v30  ;;  %v725_v13 = vmul.f32 %v693_v11, %v631_v9  ;;  %v726_v39 = vsub.f32 1.0, %v694_v20  ;;  %v727_v21 = vsub.f32 1.0, %v695_v23 }
 0x153   : > { %v3088_v18 = vadd.f32 %v653_v38, %v649_v36  ;;  %v723_v42 = vadd.f32 %v721_v8, %v717_v33  ;;  %v732_v29 = vmul.f32 %v694_v20, %v638_v25  ;;  %v733_v31 = vmul.f32 %v695_v23, %v639_v28 }
 0x154   : > { %3415 = vst [vmem:[#allocation15_spill] sm:$0xff] %v3086_v12  ;;  %v728_v2 = vmul.f32 %v726_v39, %v638_v25  ;;  %v729_v16 = vmul.f32 %v727_v21, %v639_v28  ;;  %v734_v32 = vsub.f32 1.0, %v3057_v24  ;;  %v735_v52 = vsub.f32 1.0, %v697_v26 }
 0x155   : > { %v741_v10 = vmul.f32 %v697_v26, %v647_v56  ;;  %v743_v48 = vsub.f32 1.0, %v3063_v14  ;;  %v781_v22 = vmul.f32 0.8333333, %v2929_v59  ;;  %v3094_v27 = vmul.f32 0.8333333, %v2900_v49 }
 0x156   : > { %v730_v9 = vadd.f32 %v728_v2, %v724_v46  ;;  %v731_v11 = vadd.f32 %v729_v16, %v725_v13  ;;  %v736_v30 = vmul.f32 %v734_v32, %v3083_v44  ;;  %v737_v33 = vmul.f32 %v735_v52, %v647_v56 }
 0x157   : > { %3416 = vst [vmem:[#allocation16_spill] sm:$0xff] %v3094_v27  ;;  %v745_v20 = vmul.f32 %v743_v48, %v3088_v18  ;;  %v783_v23 = vmul.f32 0.8333333, %v2932_v60  ;;  %v784_v25 = vmul.f32 0.8333333, %v2903_v50  ;;  %v799_v37 = vmul.f32 %v781_v22, %v715_v7 }
 0x158   : > { %v785_v26 = vmul.f32 0.8333333, %v2935_v61  ;;  %v3101_v28 = vadd.f32 %v736_v30, %v732_v29  ;;  %v739_v34 = vadd.f32 %v737_v33, %v733_v31  ;;  %v3104_v59 = vmul.f32 0.8333333, %v2906_v51 }
 0x159   : > { %v787_v2 = vmul.f32 0.8333333, %v2940_v62  ;;  %v3107_v35 = vadd.f32 %v745_v20, %v741_v10  ;;  %v3110_v36 = vmul.f32 0.8333333, %v2943_v63  ;;  %v801_v40 = vsub.f32 1.0, %v783_v23 }
 0x15a   : > { %v806_v50 = vmul.f32 %v3094_v27, %v3086_v12  ;;  %v807_v60 = vmul.f32 %v783_v23, %v723_v42  ;;  %v808_v61 = vsub.f32 1.0, %v784_v25  ;;  %v809_v45 = vsub.f32 1.0, %v785_v26 }
 0x15b   : > { %v803_v46 = vmul.f32 %v801_v40, %v723_v42  ;;  %v814_v56 = vmul.f32 %v784_v25, %v730_v9  ;;  %v815_v38 = vmul.f32 %v785_v26, %v731_v11  ;;  %v816_v51 = vsub.f32 1.0, %v3104_v59 }
 0x15c   : > { %v810_v8 = vmul.f32 %v808_v61, %v730_v9  ;;  %v811_v62 = vmul.f32 %v809_v45, %v731_v11  ;;  %v817_v13 = vsub.f32 1.0, %v787_v2  ;;  %v823_v39 = vmul.f32 %v787_v2, %v739_v34 }
 0x15d   : > { %v805_v21 = vadd.f32 %v803_v46, %v799_v37  ;;  %v818_v63 = vmul.f32 %v816_v51, %v3101_v28  ;;  %v825_v7 = vsub.f32 1.0, %v3110_v36  ;;  %v3118_v29 = vadd.f32 -0.6, %v2897_v47 }
 0x15e   : > { %v812_v31 = vadd.f32 %v810_v8, %v806_v50  ;;  %v813_v16 = vadd.f32 %v811_v62, %v807_v60  ;;  %v819_v32 = vmul.f32 %v817_v13, %v739_v34  ;;  %v3121_v42 = vadd.f32 -1.0, %v2914_v55 }
 0x15f   : > { %v820_v52 = vadd.f32 %v818_v63, %v814_v56  ;;  %v827_v10 = vmul.f32 %v825_v7, %v3107_v35  ;;  %v3125_v48 = vadd.f32 -1.4, %v2897_v47  ;;  %v3128_v22 = vadd.f32 -1.4, %v2914_v55 }
 0x160   : > { %v821_v9 = vadd.f32 %v819_v32, %v815_v38  ;;  %v2111_v11 = vpack.c.bf16 %v813_v16, %v805_v21  ;;  %v3131_v30 = vadd.f32 -1.8, %v2897_v47  ;;  %v3134_v33 = vadd.f32 -1.8, %v2914_v55 }
 0x161   : > { %3417 = vst [vmem:[#allocation17_spill] sm:$0xff] %v3125_v48  ;;  %v829_v20 = vadd.f32 %v827_v10, %v823_v39  ;;  %v3136_v23 = vpack.c.bf16 %v820_v52, %v812_v31  ;;  %v3139_v25 = vadd.f32 -2.2, %v2914_v55  ;;  %vm488_vm12 = vcmp.ge.f32.partialorder %v3118_v29, 0.0 }
 0x162   : > { %2148 = vst [vmem:[#allocation3 + $0x28] sm:$0xff] %v2111_v11   ;;  %vm490_vm15 = vcmp.ge.f32.partialorder %v2926_v58, 0.0  ;;  %vm491_vm3 = vcmp.ge.f32.partialorder %v3121_v42, 0.0  ;;  %vm492_vm14 = vcmp.ge.f32.partialorder %v3125_v48, 0.0  ;;  %vm546_vm10 = vmxor %vm488_vm12, %vm2655_vm4  ;;  %vm493_vm6 = vcmp.ge.f32.partialorder %v3128_v22, 0.0 }
 0x163   : > { %v2121_v26 = vpack.c.bf16 %v829_v20, %v821_v9  ;;  %vm494_vm7 = vcmp.ge.f32.partialorder %v3131_v30, 0.0  ;;  %vm495_vm5 = vcmp.ge.f32.partialorder %v3134_v33, 0.0  ;;  %vm548_vm13 = vmand %vm486_vm0, %vm546_vm10  ;;  %v3418_v34 = vmov 0.0  }
 0x164   : > { %v1973_v2 = vsel %vm548_vm13, 1.0, %v3418_v34  ;;  %vm554_vm9 = vmxor %vm490_vm15, %vm2655_vm4  ;;  %v598_v37 = vmul.f32 2.5, %v2920_v57  ;;  %v600_v40 = vmul.f32 2.5, %v3118_v29  ;;  %v601_v50 = vmul.f32 2.5, %v2967_v5 }
 0x165   : > { %2150 = vst [vmem:[#allocation3 + $0x30] sm:$0xff] %v2121_v26   ;;  %vm497_vm11 = vcmp.ge.f32.partialorder %v3139_v25, 0.0  ;;  %vm555_vm2 = vmxor %vm491_vm3, %vm2655_vm4  ;;  %v602_v60 = vmul.f32 2.5, %v2926_v58  ;;  %v603_v61 = vmul.f32 2.5, %v3121_v42  ;;  %v3167_v45 = vmul.f32 2.5, %v3125_v48 }
 0x166   : > { %v3170_v46 = vmul.f32 2.5, %v3128_v22  ;;  %vm556_vm0 = vmand %vm488_vm12, %vm554_vm9  ;;  %v3175_v56 = vmul.f32 2.5, %v3134_v33  ;;  %v648_v38 = vmul.f32 %v3068_v15, %v2998_v17  ;;  %v650_v51 = vsub.f32 1.0, %v598_v37 }
 0x167   : > { %3419 = vst [vmem:[#allocation18_spill] sm:$0xff] %v3167_v45  ;;  %v656_v8 = vmul.f32 %v1973_v2, %v598_v37  ;;  %vm557_vm10 = vmand %vm489_vm8, %vm555_vm2  ;;  %v1975_v62 = vsel %vm556_vm0, 1.0, %v3418_v34  ;;  %v657_v13 = vmul.f32 %v3081_v43, %v3004_v19  ;;  %v658_v39 = vsub.f32 1.0, %v600_v40 }
 0x168   : > { %v659_v21 = vsub.f32 1.0, %v601_v50  ;;  %v1976_v63 = vsel %vm557_vm10, 1.0, %v3418_v34  ;;  %vm562_vm12 = vmxor %vm492_vm14, %vm2655_vm4  ;;  %v652_v7 = vmul.f32 %v1973_v2, %v650_v51  ;;  %v664_v17 = vmul.f32 %v1975_v62, %v600_v40 }
 0x169   : > { %v666_v15 = vsub.f32 1.0, %v602_v60  ;;  %vm563_vm8 = vmxor %vm493_vm6, %vm2655_vm4  ;;  %v660_v31 = vmul.f32 %v1975_v62, %v658_v39  ;;  %v665_v32 = vmul.f32 %v1976_v63, %v601_v50  ;;  %v667_v52 = vsub.f32 1.0, %v603_v61  ;;  %v2425_v62 = vld [vmem:[%s2837_s14 + $0x1b8] sm:$0xff]  }
 0x16a   : > { %v661_v16 = vmul.f32 %v1976_v63, %v659_v21  ;;  %vm564_vm13 = vmand %vm490_vm15, %vm562_vm12  ;;  %v3193_v19 = vadd.f32 %v652_v7, %v648_v38  ;;  %v674_v43 = vsub.f32 1.0, %v3167_v45  ;;  %v675_v10 = vsub.f32 1.0, %v3170_v46 }
 0x16b   : > { %v683_v9 = vsub.f32 1.0, %v3175_v56  ;;  %vm565_vm9 = vmand %vm491_vm3, %vm563_vm8  ;;  %v1977_v11 = vsel %vm564_vm13, 1.0, %v3418_v34  ;;  %v662_v20 = vadd.f32 %v660_v31, %v656_v8  ;;  %v3202_v2 = vmul.f32 1.25, %v2912_v54 }
 0x16c   : > { %v663_v26 = vadd.f32 %v661_v16, %v657_v13  ;;  %v948_v37 = vld [vmem:[#allocation3 + $0x2c] sm:$0xff]  ;;  %v1978_v40 = vsel %vm565_vm9, 1.0, %v3418_v34  ;;  %vm570_vm15 = vmxor %vm494_vm7, %vm2655_vm4  ;;  %v668_v50 = vmul.f32 %v1977_v11, %v666_v15  ;;  %v672_v56 = vmul.f32 %v1977_v11, %v602_v60  ;;  %v2427_v15 = vld [vmem:[%s2837_s14 + $0x1f0] sm:$0xff]  }
 0x16d   : > { %v700_v38 = vmul.f32 1.25, %v2920_v57  ;;  %v2001_v51 = vcombine.low %v3136_v23, %v948_v37  ;;  %v2002_v8 = vcombine.high %v3136_v23, %v948_v37  ;;  %vm571_vm3 = vmxor %vm495_vm5, %vm2655_vm4  ;;  %v669_v13 = vmul.f32 %v1978_v40, %v667_v52 }
 0x16e   : > { %v673_v39 = vmul.f32 %v1978_v40, %v603_v61  ;;  %vm572_vm2 = vmand %vm492_vm14, %vm570_vm15  ;;  %v670_v21 = vadd.f32 %v668_v50, %v664_v17  ;;  %v701_v63 = vmul.f32 1.25, %v2964_v4  ;;  %v702_v60 = vmul.f32 1.25, %v3118_v29 }
 0x16f   : > { %v703_v7 = vmul.f32 1.25, %v2967_v5  ;;  %1647 = vmatprep.mubr.bf16.mxu0 %v2002_v8  ;;  %vm573_vm0 = vmand %vm493_vm6, %vm571_vm3  ;;  %v3224_v23 = vsel %vm572_vm2, 1.0, %v3418_v34  ;;  %v671_v61 = vadd.f32 %v669_v13, %v665_v32  ;;  %v3227_v31 = vmul.f32 1.25, %v2926_v58 }
 0x170   : > { %3420 = vst [vmem:[#allocation19_spill] sm:$0xff] %v3224_v23  ;;  %v705_v17 = vmul.f32 1.25, %v3121_v42  ;;  %1648 = vmatmul.mubr.bf16.vlgmr.msra.gmra.mxu0 %v2001_v51  ;;  %v1980_v16 = vsel %vm573_vm0, 1.0, %v3418_v34  ;;  %vm579_vm14 = vmxor %vm497_vm11, %vm2655_vm4  ;;  %v676_v52 = vmul.f32 %v3224_v23, %v674_v43  ;;  %v707_v11 = vmul.f32 1.25, %v3128_v22  ;;  %v2429_v51 = vld [vmem:[%s2837_s14 + $0x1b0] sm:$0xff]  }
 0x171   : > { %v748_v32 = vmul.f32 %v3202_v2, %v3193_v19  ;;  %2231 = vmatpush3.bf16.msra.mxu0 %v2425_v62  ;;  %vm581_vm6 = vmand %vm495_vm5, %vm579_vm14  ;;  %v677_v37 = vmul.f32 %v1980_v16, %v675_v10  ;;  %v681_v40 = vmul.f32 %v1980_v16, %v3170_v46  ;;  %v749_v50 = vmul.f32 %v3063_v14, %v3088_v18  ;;  %v2431_v62 = vld [vmem:[%s2837_s14 + $0x1e8] sm:$0xff]  }
 0x172   : > { %v750_v25 = vsub.f32 1.0, %v700_v38  ;;  %v1982_v8 = vsel %vm581_vm6, 1.0, %v3418_v34  ;;  %v3245_v43 = vadd.f32 %v676_v52, %v672_v56  ;;  %v751_v22 = vsub.f32 1.0, %v701_v63  ;;  %2232 = vmatprep.subr.bf16.mxu0 %v2427_v15  ;;  %vm498_vm5 = vmxor %vm476_vm1, %vm2655_vm4 }
 0x173   : > { %v756_v13 = vmul.f32 %v700_v38, %v662_v20  ;;  %v679_v58 = vadd.f32 %v677_v37, %v673_v39  ;;  %v685_v33 = vmul.f32 %v1982_v8, %v683_v9  ;;  %v757_v10 = vmul.f32 %v701_v63, %v663_v26  ;;  %v2433_v38 = vld [vmem:[%s2837_s14 + $0x1a8] sm:$0xff]   ;;  %v2435_v9 = vld [vmem:[%s2837_s14 + $0x1e0] sm:$0xff]  }
 0x174   : > { %v752_v12 = vmul.f32 %v750_v25, %v662_v20  ;;  %v753_v46 = vmul.f32 %v751_v22, %v663_v26  ;;  %v758_v16 = vsub.f32 1.0, %v702_v60  ;;  %v759_v23 = vsub.f32 1.0, %v703_v7  ;;  %v2442_v25 = vld [vmem:[%s2837_s14 + $0x1d8] sm:$0xff]  }
 0x175   : > { %v764_v14 = vmul.f32 %v702_v60, %v670_v21  ;;  %v687_v18 = vadd.f32 %v685_v33, %v681_v40  ;;  %v765_v48 = vmul.f32 %v703_v7, %v671_v61  ;;  %v766_v56 = vsub.f32 1.0, %v3227_v31  ;;  %2233 = vmatpush3.bf16.msra.mxu0 %v2429_v51 }
 0x176   : > { %v3248_v45 = vadd.f32 %v752_v12, %v748_v32  ;;  %v755_v52 = vadd.f32 %v753_v46, %v749_v50  ;;  %v760_v15 = vmul.f32 %v758_v16, %v670_v21  ;;  %v761_v27 = vmul.f32 %v759_v23, %v671_v61  ;;  %2234 = vmatprep.subr.bf16.mxu0 %v2431_v62  ;;  %v2437_v50 = vld [vmem:[%s2837_s14 + $0x1a0] sm:$0xff]  }
 0x177   : > { %v767_v39 = vsub.f32 1.0, %v705_v17  ;;  %v768_v20 = vmul.f32 %v766_v56, %v3245_v43  ;;  %v773_v26 = vmul.f32 %v705_v17, %v679_v58  ;;  %v775_v63 = vsub.f32 1.0, %v707_v11 }
 0x178   : > { %v3255_v12 = vmul.f32 0.8333333, %v2912_v54  ;;  %v762_v60 = vadd.f32 %v760_v15, %v756_v13  ;;  %v763_v7 = vadd.f32 %v761_v27, %v757_v10  ;;  %v791_v37 = vmul.f32 0.8333333, %v2946_v0 }
 0x179   : > { %v769_v32 = vmul.f32 %v767_v39, %v679_v58  ;;  %v3258_v40 = vadd.f32 %v768_v20, %v764_v14  ;;  %v777_v21 = vmul.f32 %v775_v63, %v687_v18  ;;  %v792_v23 = vmul.f32 0.8333333, %v2920_v57  ;;  %2235 = vmatpush3.bf16.msra.mxu0 %v2433_v38  ;;  %v2448_v63 = vld [vmem:[%s2837_s14 + $0x190] sm:$0xff]  }
 0x17a   : > { %v793_v61 = vmul.f32 0.8333333, %v2964_v4  ;;  %v3265_v11 = vmul.f32 0.8333333, %v3118_v29  ;;  %v795_v54 = vmul.f32 0.8333333, %v2967_v5  ;;  %2236 = vmatprep.subr.bf16.mxu0 %v2435_v9  ;;  %v831_v27 = vmul.f32 %v3110_v36, %v3107_v35 }
 0x17b   : > { %v771_v17 = vadd.f32 %v769_v32, %v765_v48  ;;  %v797_v58 = vmul.f32 0.8333333, %v3121_v42  ;;  %v779_v0 = vadd.f32 %v777_v21, %v773_v26  ;;  %v833_v57 = vsub.f32 1.0, %v791_v37  ;;  %v2444_v42 = vld [vmem:[%s2837_s14 + $0x198] sm:$0xff]   ;;  %v2446_v36 = vld [vmem:[%s2837_s14 + $0x1d0] sm:$0xff]  }
 0x17c   : > { %v838_v4 = vmul.f32 %v3255_v12, %v3248_v45  ;;  %v839_v51 = vmul.f32 %v791_v37, %v755_v52  ;;  %v840_v48 = vsub.f32 1.0, %v792_v23  ;;  %v841_v8 = vsub.f32 1.0, %v793_v61  ;;  %v2450_v37 = vld [vmem:[%s2837_s14 + $0x1c8] sm:$0xff]  }
 0x17d   : > { %v846_v29 = vmul.f32 %v792_v23, %v762_v60  ;;  %v835_v22 = vmul.f32 %v833_v57, %v755_v52  ;;  %v847_v13 = vmul.f32 %v793_v61, %v763_v7  ;;  %v848_v5 = vsub.f32 1.0, %v3265_v11  ;;  %2237 = vmatpush3.bf16.msra.mxu0 %v2437_v50 }
 0x17e   : > { %v849_v62 = vsub.f32 1.0, %v795_v54  ;;  %v842_v33 = vmul.f32 %v840_v48, %v762_v60  ;;  %v843_v10 = vmul.f32 %v841_v8, %v763_v7  ;;  %v855_v46 = vmul.f32 %v795_v54, %v771_v17  ;;  %2238 = vmatprep.subr.bf16.mxu0 %v2442_v25 }
 0x17f   : > { %v857_v35 = vsub.f32 1.0, %v797_v58  ;;  %v837_v16 = vadd.f32 %v835_v22, %v831_v27  ;;  %v850_v14 = vmul.f32 %v848_v5, %v3258_v40  ;;  %v1933_v56 = vmul.f32 -1.442695, %v2897_v47  ;;  %v2454_v27 = vld [vmem:[%s2837_s14 + $0x1c0] sm:$0xff]  }
 0x180   : > { %v851_v18 = vmul.f32 %v849_v62, %v771_v17  ;;  %v844_v38 = vadd.f32 %v842_v33, %v838_v4  ;;  %v845_v52 = vadd.f32 %v843_v10, %v839_v51  ;;  %v1934_v39 = vmul.f32 -1.442695, %v2914_v55  ;;  %v3421_v22 = vld [vmem:[#allocation16_spill] sm:$0xff] }
 0x181   : > { %v859_v15 = vmul.f32 %v857_v35, %v779_v0  ;;  %v852_v9 = vadd.f32 %v850_v14, %v846_v29  ;;  %2474 = vpow2.f32 %v1933_v56  ;;  %v1937_v26 = vadd.f32 2.2, %v2897_v47  ;;  %2239 = vmatpush3.bf16.msra.mxu0 %v2444_v42  ;;  %v2456_v29 = vld [vmem:[%s2837_s14 + $0x180] sm:$0xff]   ;;  %v3424_v42 = vld [vmem:[#allocation19_spill] sm:$0xff] }
 0x182   : > { %v853_v20 = vadd.f32 %v851_v18, %v847_v13  ;;  %v2131_v7 = vpack.c.bf16 %v845_v52, %v837_v16  ;;  %2476 = vpow2.f32 %v1934_v39  ;;  %v610_v32 = vsub.f32 1.0, %v2961_v3  ;;  %2240 = vmatprep.subr.bf16.mxu0 %v2446_v36  ;;  %v2452_v3 = vld [vmem:[%s2837_s14 + $0x188] sm:$0xff]  }
 0x183   : > { %v861_v60 = vadd.f32 %v859_v15, %v855_v46  ;;  %v3286_v21 = vpack.c.bf16 %v852_v9, %v844_v38  ;;  %vm474_vm11 = vcmp.ge.f32.partialorder %v1937_v26, 0.0  ;;  %v586_v61 = vmul.f32 2.5, %v1937_v26  ;;  %v3425_v46 = vld [vmem:[#allocation15_spill] sm:$0xff]  ;;  %v3426_v9 = vld [vmem:[#allocation14_spill] sm:$0xff] }
 0x184   : > { %2152 = vst [vmem:[#allocation3 + $0x38] sm:$0xff] %v2131_v7   ;;  %vm500_vm10 = vmand %vm474_vm11, %vm498_vm5  ;;  %v612_v49 = vmul.f32 %v2956_v1, %v610_v32  ;;  %v740_v25 = vmul.f32 %v3057_v24, %v3083_v44  ;;  %v742_v17 = vsub.f32 1.0, %v3202_v2  ;;  %v710_v58 = vsub.f32 1.0, %v3039_v6 }
 0x185   : > { %v2141_v23 = vpack.c.bf16 %v861_v60, %v853_v20  ;;  %v1961_v50 = vsel %vm500_vm10, 1.0, %v3418_v34  ;;  %2241 = vmatpush3.bf16.msra.mxu0 %v2448_v63  ;;  %v788_v0 = vmul.f32 0.8333333, %v2909_v53  ;;  %v688_v57 = vmul.f32 1.25, %v1937_v26 }
 0x186   : > { %v608_v54 = vmul.f32 %v1961_v50, %v586_v61  ;;  %2242 = vmatprep.subr.bf16.mxu0 %v2450_v37  ;;  %v744_v1 = vmul.f32 %v742_v17, %v3193_v19  ;;  %v832_v4 = vsub.f32 1.0, %v3255_v12  ;;  %v1959_v24 = vadd.f32 -2.2, %v2897_v47 }
 0x187   : > { %2154 = vst [vmem:[#allocation3 + $0x40] sm:$0xff] %v2141_v23   ;;  %v712_v2 = vmul.f32 %v710_v58, %v3029_v41  ;;  %v822_v51 = vmul.f32 %v3104_v59, %v3101_v28  ;;  %v606_v6 = vmul.f32 2.5, %v3131_v30  ;;  %v824_v8 = vsub.f32 1.0, %v788_v0  ;;  %v3422_v41 = vld [vmem:[#allocation17_spill] sm:$0xff]  ;;  %v3423_v59 = vld [vmem:[#allocation18_spill] sm:$0xff] }
 0x188   : > { %v614_v44 = vadd.f32 %v612_v49, %v608_v54  ;;  %v746_v48 = vadd.f32 %v744_v1, %v740_v25  ;;  %v834_v53 = vmul.f32 %v832_v4, %v3248_v45  ;;  %vm496_vm1 = vcmp.ge.f32.partialorder %v1959_v24, 0.0  ;;  %v2445_v24 = vld [vmem:[%s2837_s14 + $0x170] sm:$0xff]  }
 0x189   : > { %2243 = vmatpush3.bf16.msra.mxu0 %v2452_v3  ;;  %v800_v12 = vsub.f32 1.0, %v3421_v22  ;;  %vm578_vm12 = vmxor %vm496_vm1, %vm2655_vm4  ;;  %v682_v13 = vsub.f32 1.0, %v606_v6  ;;  %v706_v5 = vmul.f32 1.25, %v3422_v41  ;;  %v680_v45 = vmul.f32 %v3424_v42, %v3423_v59  ;;  %v2455_v6 = vld [vmem:[%s2837_s14 + $0x120] sm:$0xff]   ;;  %v2462_v22 = vld [vmem:[%s2837_s14 + $0x108] sm:$0xff]  }
 0x18a   : > { %v708_v19 = vmul.f32 %v688_v57, %v614_v44  ;;  %2244 = vmatprep.subr.bf16.mxu0 %v2454_v27  ;;  %v826_v62 = vmul.f32 %v824_v8, %v746_v48  ;;  %v830_v28 = vmul.f32 %v788_v0, %v746_v48  ;;  %vm580_vm8 = vmand %vm494_vm7, %vm578_vm12  ;;  %v780_v10 = vmul.f32 0.8333333, %v1937_v26  ;;  %v2449_v44 = vld [vmem:[%s2837_s14 + $0x168] sm:$0xff]   ;;  %v2457_v48 = vld [vmem:[%s2837_s14 + $0x158] sm:$0xff]  }
 0x18b   : > { %v802_v35 = vmul.f32 %v800_v12, %v3425_v46  ;;  %v1981_v36 = vsel %vm580_vm8, 1.0, %v3418_v34  ;;  %v772_v38 = vmul.f32 %v3227_v31, %v3245_v43  ;;  %v774_v39 = vsub.f32 1.0, %v706_v5  ;;  %v2458_v8 = vld [vmem:[%s2837_s14 + $0x118] sm:$0xff]   ;;  %v2463_v12 = vld [vmem:[%s2837_s14 + $0x140] sm:$0xff]  }
 0x18c   : > { %v714_v33 = vadd.f32 %v712_v2, %v708_v19  ;;  %v828_v14 = vadd.f32 %v826_v62, %v822_v51  ;;  %v836_v18 = vadd.f32 %v834_v53, %v830_v28  ;;  %v684_v56 = vmul.f32 %v1981_v36, %v682_v13  ;;  %v2451_v2 = vld [vmem:[%s2837_s14 + $0x128] sm:$0xff]   ;;  %v2453_v51 = vld [vmem:[%s2837_s14 + $0x160] sm:$0xff]   ;;  %v2459_v53 = vld [vmem:[%s2837_s14 + $0x150] sm:$0xff]  }
 0x18d   : > { %2245 = vmatpush3.bf16.msra.mxu0 %v2456_v29  ;;  %v796_v20 = vmul.f32 0.8333333, %v3426_v9  ;;  %v854_v49 = vmul.f32 %v3265_v11, %v3258_v40  ;;  %v2443_v40 = vld [vmem:[%s2837_s14 + $0x138] sm:$0xff]   ;;  %v949_v11 = vld [vmem:[#allocation3 + $0x34] sm:$0xff]  ;;  %v2460_v29 = vld [vmem:[%s2837_s14 + $0x110] sm:$0xff]   ;;  %vm3427_vm4 = vmmov 0  }
 0x18e   : > { %v950_v16 = vld [vmem:[#allocation3 + $0x3c] sm:$0xff]  ;;  %v2475_v52 = vpop.eup %2474  ;;  %v798_v15 = vmul.f32 %v780_v10, %v714_v33  ;;  %v3320_v7 = vpack.c.bf16 %v836_v18, %v828_v14  ;;  %v686_v32 = vadd.f32 %v684_v56, %v680_v45  ;;  %v2464_v13 = vld [vmem:[%s2837_s14 + $0x100] sm:$0xff]   ;;  %v2465_v41 = vld [vmem:[%s2837_s14 + $0x238] sm:$0xff]  }
 0x18f   : > { %v2006_v30 = vcombine.high %v3286_v21, %v950_v16  ;;  %v2477_v26 = vpop.eup %2476  ;;  %v2005_v63 = vcombine.low %v3286_v21, %v950_v16  ;;  %v432_v60 = vadd.f32 1.0, %v2475_v52  ;;  %v856_v50 = vsub.f32 1.0, %v796_v20  ;;  %v2461_v19 = vld [vmem:[%s2837_s14 + $0x148] sm:$0xff]   ;;  %v2466_v62 = vld [vmem:[%s2837_s14 + $0x230] sm:$0xff]   ;;  %v2468_v59 = vld [vmem:[%s2837_s14 + $0x220] sm:$0xff]  }
 0x190   : > { %v433_v37 = vadd.f32 1.0, %v2477_v26  ;;  %v804_v23 = vadd.f32 %v802_v35, %v798_v15  ;;  %v776_v31 = vmul.f32 %v774_v39, %v686_v32  ;;  %v2003_v5 = vcombine.low %v3320_v7, %v949_v11  ;;  %v2467_v28 = vld [vmem:[%s2837_s14 + $0x228] sm:$0xff]   ;;  %v2469_v42 = vld [vmem:[%s2837_s14 + $0x218] sm:$0xff]   ;;  %v2470_v45 = vld [vmem:[%s2837_s14 + $0x210] sm:$0xff]  }
 0x191   : > { %1729 = vmatprep.mubr.bf16.mxu0 %v2006_v30  ;;  %2478 = vrcp.f32 %v432_v60  ;;  %v2471_v33 = vld [vmem:[%s2837_s14 + $0x208] sm:$0xff]   ;;  %v2472_v10 = vld [vmem:[%s2837_s14 + $0x200] sm:$0xff]  }
 0x192   : > { %1730 = vmatmul.mubr.bf16.vlgmr.msra.gmra.mxu0 %v2005_v63  ;;  %2480 = vrcp.f32 %v433_v37  ;;  %v2090_v43 = vpack.c.bf16 %v804_v23, %v804_v23  ;;  %v778_v61 = vadd.f32 %v776_v31, %v772_v38 }
 0x194   : > { %870 = vst [vmem:[#allocation3 + $0x4] sm:$0xf] %v2090_v43  ;;  %v858_v21 = vmul.f32 %v856_v50, %v778_v61 }
 0x196   : > { %v860_v25 = vadd.f32 %v858_v21, %v854_v49 }
 0x198   : > { %v2104_v17 = vpack.c.bf16 %v860_v25, %v860_v25 }
 0x19a   : > { %940 = vst [vmem:[#allocation3 + $0x20] sm:$0xf] %v2104_v17 }
 0x19b   : > { %v2440_v4 = vld [vmem:[#allocation3 + $0x4] ss:$36 sps:$4 sm:$0xff]  }
 0x19c   : > { %1606 = vmatprep.mubr.bf16.mxu1 %v2440_v4 }
 0x19e   : > { %v2479_v3 = vpop.eup %2478 }
 0x19f   : > { %v2481_v54 = vpop.eup %2480  ;;  %v438_v58 = vmul.f32 %v2479_v3, %v2897_v47  ;;  %v2004_v47 = vcombine.high %v3320_v7, %v949_v11 }
 0x1a0   : > { %v439_v0 = vmul.f32 %v2481_v54, %v2914_v55  ;;  %v2447_v55 = vld [vmem:[%s2837_s14 + $0x130] sm:$0xff]  }
 0x1a1   : > { %v2088_v27 = vpack.c.bf16 %v438_v58, %v438_v58  ;;  %v2473_v46 = vld [vmem:[#allocation3 + $0x20] ss:$36 sps:$4 sm:$0xff]  }
 0x1a2   : > { %v2089_v57 = vpack.c.bf16 %v439_v0, %v439_v0 }
 0x1a3   : > { %448 = vst [vmem:[#allocation3] sm:$0xf] %v2088_v27 }
 0x1a4   : > { %449 = vst [vmem:[#allocation3 + $0x24] sm:$0xf] %v2089_v57 }
 0x1ab   : > { %v2438_v1 = vld [vmem:[#allocation3] ss:$36 sps:$4 sm:$0xff]  }
 0x1ac   : > { %1607 = vmatmul.mubr.bf16.vlgmr.msra.gmra.mxu1 %v2438_v1 }
 0x1ad   : > { %2209 = vmatpush3.bf16.msra.mxu1 %v2443_v40  ;;  %1688 = vmatprep.mubr.bf16.mxu1 %v2004_v47 }
 0x1ae   : > { %2210 = vmatprep.subr.bf16.mxu1 %v2445_v24 }
 0x1b1   : > { %2211 = vmatpush3.bf16.msra.mxu1 %v2447_v55 }
 0x1b2   : > { %2212 = vmatprep.subr.bf16.mxu1 %v2449_v44 }
 0x1b5   : > { %2213 = vmatpush3.bf16.msra.mxu1 %v2451_v2 }
 0x1b6   : > { %2214 = vmatprep.subr.bf16.mxu1 %v2453_v51 }
 0x1b9   : > { %2215 = vmatpush3.bf16.msra.mxu1 %v2455_v6 }
 0x1ba   : > { %2216 = vmatprep.subr.bf16.mxu1 %v2457_v48 }
 0x1bd   : > { %2217 = vmatpush3.bf16.msra.mxu1 %v2458_v8 }
 0x1be   : > { %2218 = vmatprep.subr.bf16.mxu1 %v2459_v53 }
 0x1c1   : > { %2219 = vmatpush3.bf16.msra.mxu1 %v2460_v29 }
 0x1c2   : > { %2220 = vmatprep.subr.bf16.mxu1 %v2461_v19 }
 0x1c5   : > { %2221 = vmatpush3.bf16.msra.mxu1 %v2462_v22 }
 0x1c6   : > { %2222 = vmatprep.subr.bf16.mxu1 %v2463_v12 }
 0x1c9   : > { %2223 = vmatpush3.bf16.msra.mxu1 %v2464_v13 }
 0x1ca   : > { %2281 = vmatprep.subr.bf16.mxu1 %v3418_v34 }
 0x1cc   : > { %1689 = vmatmul.mubr.bf16.vlgmr.msra.gmra.mxu1 %v2003_v5 }
 0x1cd   : > { %2282 = vmatpush3.bf16.msra.mxu1 %v2465_v41  ;;  %2297 = vmatprep.mubr.msk.bf16.mxu1 %vm3427_vm4, %v3418_v34 }
 0x1ce   : > { %2283 = vmatprep.subr.bf16.mxu1 %v3418_v34 }
 0x1d1   : > { %2284 = vmatpush3.bf16.msra.mxu1 %v2466_v62 }
 0x1d2   : > { %2285 = vmatprep.subr.bf16.mxu1 %v3418_v34 }
 0x1d5   : > { %2286 = vmatpush3.bf16.msra.mxu1 %v2467_v28 }
 0x1d6   : > { %2287 = vmatprep.subr.bf16.mxu1 %v3418_v34 }
 0x1d9   : > { %2288 = vmatpush3.bf16.msra.mxu1 %v2468_v59 }
 0x1da   : > { %2289 = vmatprep.subr.bf16.mxu1 %v3418_v34 }
 0x1dd   : > { %2290 = vmatpush3.bf16.msra.mxu1 %v2469_v42 }
 0x1de   : > { %2291 = vmatprep.subr.bf16.mxu1 %v3418_v34 }
 0x1e1   : > { %2292 = vmatpush3.bf16.msra.mxu1 %v2470_v45 }
 0x1e2   : > { %2293 = vmatprep.subr.bf16.mxu1 %v3418_v34 }
 0x1e5   : > { %2294 = vmatpush3.bf16.msra.mxu1 %v2471_v33 }
 0x1e6   : > { %2295 = vmatprep.subr.bf16.mxu1 %v3418_v34 }
 0x1e9   : > { %2296 = vmatpush3.bf16.msra.mxu1 %v2472_v10 }
 0x1ec   : > { %2298 = vmatmul.mubr.bf16.vlgmr.msra.gmra.mxu1 %v2473_v46 }
 0x230   : > { %v2202_v16 = vpop.f32.mrf.mxu0 }
 0x232   : > { %v2203_v18 = vpop.f32.mrf.mxu0 }
 0x233   : > { %v2204_v7 = vadd.f32 %v2203_v18, %v2202_v16 }
 0x234   : > { %v2205_v38 = vpop.f32.mrf.mxu0 }
 0x236   : > { %v2206_v30 = vpop.f32.mrf.mxu0 }
 0x237   : > { %v2207_v32 = vadd.f32 %v2206_v30, %v2205_v38 }
 0x252   : > { %v2246_v39 = vpop.f32.mrf.mxu0 }
 0x254   : > { %v2247_v20 = vpop.f32.mrf.mxu0 }
 0x255   : > { %v2248_v25 = vadd.f32 %v2247_v20, %v2246_v39 }
 0x256   : > { %v2249_v34 = vpop.f32.mrf.mxu0 }
 0x258   : > { %v2250_v61 = vpop.f32.mrf.mxu0 }
 0x259   : > { %v2251_v17 = vadd.f32 %v2250_v61, %v2249_v34 }
 0x26c   : > { %v2180_v35 = vpop.f32.mrf.mxu1 }
 0x26e   : > { %v2181_v36 = vpop.f32.mrf.mxu1 }
 0x26f   : > { %v2182_v63 = vadd.f32 %v2181_v36, %v2180_v35 }
 0x270   : > { %v2183_v14 = vpop.f32.mrf.mxu1 }
 0x271   : > { %v1650_v31 = vadd.f32 %v2204_v7, %v2182_v63 }
 0x272   : > { %v2184_v56 = vpop.f32.mrf.mxu1 }
 0x273   : > { %v2185_v60 = vadd.f32 %v2184_v56, %v2183_v14 }
 0x275   : > { %v1653_v43 = vadd.f32 %v2207_v32, %v2185_v60 }
 0x28c   : > { %v2224_v52 = vpop.f32.mrf.mxu1 }
 0x28e   : > { %v2225_v15 = vpop.f32.mrf.mxu1 }
 0x28f   : > { %v2226_v37 = vadd.f32 %v2225_v15, %v2224_v52 }
 0x290   : > { %v2227_v9 = vpop.f32.mrf.mxu1 }
 0x291   : > { %v1691_v49 = vadd.f32 %v2226_v37, %v1650_v31 }
 0x292   : > { %v2228_v26 = vpop.f32.mrf.mxu1 }
 0x293   : > { %v2229_v23 = vadd.f32 %v2228_v26, %v2227_v9  ;;  %v1732_v54 = vadd.f32 %v2248_v25, %v1691_v49 }
 0x295   : > { %v1694_v50 = vadd.f32 %v2229_v23, %v1653_v43 }
 0x297   : > { %v1735_v58 = vadd.f32 %v2251_v17, %v1694_v50 }
 0x2ac   : > { %v1772_v21 = vpop.f32.mrf.mxu1 }
 0x2ad   : > { %v1773_v27 = vadd.f32 %v1772_v21, %v1732_v54 }
 0x2ae   : > { %v2299_v3 = vpop.f32.mrf.mxu1 }
 0x2b0   : > { %v1775_v0 = vpop.f32.mrf.mxu1 }
 0x2b1   : > { %v1776_v57 = vadd.f32 %v1775_v0, %v1735_v58  ;;  %1792 = sbr.rel (%p2082_p5) target bundleno = 695 (0x2b7), region = 56 }
 0x2b2   : > { %v2300_v40 = vpop.f32.mrf.mxu1 }
 0x2b3   : > { %v2146_v11 = vpack.c.bf16 %v1776_v57, %v1773_v27 }
 0x2b5   : > { %2147 = vst [vmem:[#allocation2] sm:$0xff] %v2146_v11  }
 0x2b6   : > { %1793 = vst [vmem:[#allocation10] sm:$0xff] %v1773_v27  ;;  %1794 = vst [vmem:[#allocation10 + $0x8] sm:$0xff] %v1776_v57 }
 0x2b7 PF: > { %p2330_p8 = scmp.eq.s32.totalorder %s2759_s25, 2  ;;  %s2656_s29 = smov [#allocation10]  }
 0x2b8   : > { %s1804_s10 = sshll.u32 %s2656_s29, 4  ;;  %s1805_s10 = int_to_ptr.vmem [resolvable:$true] %s1804_s10 }
 0x2b9   : > { %s2564_s5 = scalar_lea.vmem %s1805_s10, 256  ;;  %p2571_p9 = scmp.lt.s32.totalorder %s1805_s10, %s1805_s10 }
 0x2ba   : > { %p2565_p10 = scmp.ne.s32.totalorder %s1805_s10, %s2564_s5  ;;  %p2572_p11 = scmp.lt.s32.totalorder %s2564_s5, %s2564_s5 }
 0x2bc   : > { %p2566_p4 = pnand %p2565_p10, %p2330_p8  ;;  %p2573_p12 = por %p2572_p11, %p2571_p9 }
 0x2be   : > { %p2567_p7 = pneg %p2566_p4 }
 0x2c0   : > { %p2574_p13 = pnand %p2573_p12, %p2567_p7 }
 0x2c2   : > { %2577 = shalt.err (!%p2574_p13)
}
 0x2c3   : > { %s2657_s18 = smov 128   ;;  %s2658_s9 = smov 8  }
 0x2c4   : > { %2313 = dma.vmem_to_hbm [thread:$0]  (%p2330_p8), %s1805_s10, 256, %s3396_s4, [#allocation6], %s2657_s18, %s2657_s18, %s2658_s9  }
 0x2c5   : > { %2621 = dma.done.wait (%p2330_p8), [#allocation6], 256  }
 0x2c6   : > { %2623 = vsyncadd (%p2330_p8), [#allocation6], 4294967040 }
 0x2c7 PF: > { %s19_s20 = sadd.s32 1, %s2646_s20   ;;  %s3428_s15 = smov %s2630_s16 }
 0x2c8   : > { %p16_p0 = scmp.ge.s32.totalorder %s19_s20, 5   ;;  %s3429_s16 = smov %s2634_s17 }
 0x2c9   : > { %s3430_s17 = smov %s2731_s27  ;;  %s3431_s18 = smov %s2642_s19 }
 0x2ca   : > { %s3432_s19 = smov %s3434_s21  ;;  %18 = sbr.rel (!%p16_p0) target bundleno = 6 (0x6), region = 102 }
 0x2cf   :  { %1820 = vsyncpa [#allocation5], 1 }
 0x2d0   :  { %1822 = vsyncpa [#allocation5 + $0x1], 1 }
 0x2d1   :  { %1823 = vsyncpa [#allocation8], 1 }
 0x2d2   :  { %1825 = vsyncpa [#allocation8 + $0x1], 1 }
 0x2d3   :  { %1826 = vsyncpa [#allocation6], 1 }
 0x2d4   :  { %1828 = vsyncpa [#allocation6 + $0x1], 1 }

</bundles_post_ra>
